<compile_context>
chip_gen: v7x
topology: tpu7x:2x2x1
jax: 0.10.0
libtpu: 0.0.40
codegen_flags: <defaults>
</compile_context>

<pallas_src>
import functools

import jax
import jax.numpy as jnp
from jax.experimental import pallas as pl
from jax.experimental.pallas import tpu as pltpu


def _round_up(x, m):
    return ((x + m - 1) // m) * m


def _pick_tm(M):
    """Large M tile (few grid steps), but keep >=2 parallel tiles when possible."""
    Mr = _round_up(M, 8)
    if Mr >= 1024:
        tm = 512
    elif Mr >= 16:
        tm = _round_up((Mr + 1) // 2, 8)   # two parallel M tiles for megacore
    else:
        tm = Mr
    return tm, _round_up(M, tm)


def _pick_tn(Np):
    """Largest lane-dense tile that divides the (128-rounded) output width."""
    for t in (512, 384, 256, 128):
        if Np % t == 0:
            return t
    return 128


# ----------------------------- Pallas kernels --------------------------------
def _mm_bias_kernel(x_ref, w_ref, b_ref, o_ref):
    # Single-K fast path: no accumulator scratch, bias fused into the store.
    o_ref[...] = (
        jnp.dot(x_ref[...], w_ref[...], preferred_element_type=jnp.float32)
        + b_ref[...]
    ).astype(o_ref.dtype)


def _mm_bias_acc_kernel(x_ref, w_ref, b_ref, o_ref, acc_ref):
    # General path (K tiled over grid axis 2) with an f32 VMEM accumulator.
    k = pl.program_id(2)

    @pl.when(k == 0)
    def _():
        acc_ref[...] = jnp.zeros_like(acc_ref)

    acc_ref[...] += jnp.dot(
        x_ref[...], w_ref[...], preferred_element_type=jnp.float32
    )

    @pl.when(k == pl.num_programs(2) - 1)
    def _():
        o_ref[...] = (acc_ref[...] + b_ref[...]).astype(o_ref.dtype)


def _fused2_kernel(x_ref, w1_ref, b1_ref, w2_ref, b2_ref, o_ref):
    # (x @ W1 + b1) @ W2 + b2 with the intermediate kept in VMEM (bf16).
    h = (
        jnp.dot(x_ref[...], w1_ref[...], preferred_element_type=jnp.float32)
        + b1_ref[...]
    ).astype(jnp.bfloat16)
    o_ref[...] = (
        jnp.dot(h, w2_ref[...], preferred_element_type=jnp.float32) + b2_ref[...]
    ).astype(o_ref.dtype)


# ----------------------------- matmul wrappers --------------------------------
def _matmul_bias(x, w, b, out_dtype):
    """out[M, N] = x[M, K] @ w[K, N] + b[N]."""
    M, K = x.shape
    _, N = w.shape
    Kp = _round_up(K, 128)          # pad K only to 128, never to the tile size
    Np = _round_up(N, 128)          # pad N only to 128
    tn = _pick_tn(Np)
    tm, Mp = _pick_tm(M)

    # Cast to bf16 BEFORE padding (halves the pad-copy bandwidth).
    xb = jnp.pad(x.astype(jnp.bfloat16), ((0, Mp - M), (0, Kp - K)))
    wb = jnp.pad(w.astype(jnp.bfloat16), ((0, Kp - K), (0, Np - N)))
    bb = jnp.pad(b.astype(jnp.float32), ((0, Np - N),)).reshape(1, Np)

    out_bytes = jnp.dtype(out_dtype).itemsize
    cost = pl.CostEstimate(
        flops=2 * Mp * Kp * Np,
        transcendentals=0,
        bytes_accessed=xb.size * 2 + wb.size * 2 + bb.size * 4 + Mp * Np * out_bytes,
    )

    if Kp <= 1024:
        # Single full-extent K block -> no-accumulator fast path.
        grid = (Mp // tm, Np // tn)
        out = pl.pallas_call(
            _mm_bias_kernel,
            out_shape=jax.ShapeDtypeStruct((Mp, Np), out_dtype),
            grid_spec=pltpu.PrefetchScalarGridSpec(
                num_scalar_prefetch=0,
                grid=grid,
                in_specs=[
                    pl.BlockSpec((tm, Kp), lambda i, j: (i, 0)),
                    pl.BlockSpec((Kp, tn), lambda i, j: (0, j)),
                    pl.BlockSpec((1, tn), lambda i, j: (0, j)),
                ],
                out_specs=pl.BlockSpec((tm, tn), lambda i, j: (i, j)),
            ),
            compiler_params=pltpu.CompilerParams(
                dimension_semantics=("parallel", "parallel"),
                vmem_limit_bytes=32 * 1024 * 1024,
            ),
            cost_estimate=cost,
        )(xb, wb, bb)
    else:
        tk = 512
        Kp2 = _round_up(Kp, tk)
        xb = jnp.pad(xb, ((0, 0), (0, Kp2 - Kp)))
        wb = jnp.pad(wb, ((0, Kp2 - Kp), (0, 0)))
        grid = (Mp // tm, Np // tn, Kp2 // tk)
        out = pl.pallas_call(
            _mm_bias_acc_kernel,
            out_shape=jax.ShapeDtypeStruct((Mp, Np), out_dtype),
            grid_spec=pltpu.PrefetchScalarGridSpec(
                num_scalar_prefetch=0,
                grid=grid,
                in_specs=[
                    pl.BlockSpec((tm, tk), lambda i, j, k: (i, k)),
                    pl.BlockSpec((tk, tn), lambda i, j, k: (k, j)),
                    pl.BlockSpec((1, tn), lambda i, j, k: (0, j)),
                ],
                out_specs=pl.BlockSpec((tm, tn), lambda i, j, k: (i, j)),
                scratch_shapes=[pltpu.VMEM((tm, tn), jnp.float32)],
            ),
            compiler_params=pltpu.CompilerParams(
                dimension_semantics=("parallel", "parallel", "arbitrary"),
                vmem_limit_bytes=32 * 1024 * 1024,
            ),
            cost_estimate=cost,
        )(xb, wb, bb)
    return out[:M, :N]


def _fused_two_matmul_bias(x, w1, b1, w2, b2, out_dtype):
    """out = (x @ w1 + b1) @ w2 + b2, one pallas_call, intermediate in VMEM."""
    M, K = x.shape
    _, N1 = w1.shape
    _, N2 = w2.shape
    Kp = _round_up(K, 128)
    N1p = _round_up(N1, 128)
    N2p = _round_up(N2, 128)
    tn = _pick_tn(N2p)
    tm, Mp = _pick_tm(M)

    xb = jnp.pad(x.astype(jnp.bfloat16), ((0, Mp - M), (0, Kp - K)))
    w1b = jnp.pad(w1.astype(jnp.bfloat16), ((0, Kp - K), (0, N1p - N1)))
    b1b = jnp.pad(b1.astype(jnp.float32), ((0, N1p - N1),)).reshape(1, N1p)
    w2b = jnp.pad(w2.astype(jnp.bfloat16), ((0, N1p - N1), (0, N2p - N2)))
    b2b = jnp.pad(b2.astype(jnp.float32), ((0, N2p - N2),)).reshape(1, N2p)

    out_bytes = jnp.dtype(out_dtype).itemsize
    cost = pl.CostEstimate(
        flops=2 * Mp * Kp * N1p + 2 * Mp * N1p * N2p,
        transcendentals=0,
        bytes_accessed=(xb.size * 2 + w1b.size * 2 + b1b.size * 4
                        + w2b.size * 2 + b2b.size * 4 + Mp * N2p * out_bytes),
    )

    grid = (Mp // tm, N2p // tn)
    out = pl.pallas_call(
        _fused2_kernel,
        out_shape=jax.ShapeDtypeStruct((Mp, N2p), out_dtype),
        grid_spec=pltpu.PrefetchScalarGridSpec(
            num_scalar_prefetch=0,
            grid=grid,
            in_specs=[
                pl.BlockSpec((tm, Kp), lambda i, j: (i, 0)),
                pl.BlockSpec((Kp, N1p), lambda i, j: (0, 0)),
                pl.BlockSpec((1, N1p), lambda i, j: (0, 0)),
                pl.BlockSpec((N1p, tn), lambda i, j: (0, j)),
                pl.BlockSpec((1, tn), lambda i, j: (0, j)),
            ],
            out_specs=pl.BlockSpec((tm, tn), lambda i, j: (i, j)),
        ),
        compiler_params=pltpu.CompilerParams(
            dimension_semantics=("parallel", "parallel"),
            vmem_limit_bytes=32 * 1024 * 1024,
        ),
        cost_estimate=cost,
    )(xb, w1b, b1b, w2b, b2b)
    return out[:M, :N2]


# ----------------------------- conv glue --------------------------------------
def _im2col(x_nhwc, ksize, stride, pad):
    """Extract conv patches (static k/stride/pad). Returns (N*Ho*Wo, k*k*C), Ho, Wo."""
    # TODO(synk): fuse im2col into the pallas_call (halo-tiled NHWC block with 9
    # shifted in-kernel dot accumulations) to avoid materializing the 9x patches.
    N, H, W, C = x_nhwc.shape
    xp = jnp.pad(x_nhwc, ((0, 0), (pad, pad), (pad, pad), (0, 0)))
    Ho = (H + 2 * pad - ksize) // stride + 1
    Wo = (W + 2 * pad - ksize) // stride + 1
    cols = []
    for i in range(ksize):
        for j in range(ksize):
            cols.append(
                xp[:, i:i + stride * Ho:stride, j:j + stride * Wo:stride, :]
            )
    patches = jnp.concatenate(cols, axis=-1)  # (N, Ho, Wo, k*k*C)
    return patches.reshape(N * Ho * Wo, ksize * ksize * C), Ho, Wo


def conv2d_pallas(x_nhwc, weight, bias, stride, pad, out_dtype=jnp.bfloat16):
    """Conv2d with PyTorch-style weight (Cout, Cin, kh, kw), NHWC activations."""
    Cout, Cin, kh, kw = weight.shape
    N, H, W, _ = x_nhwc.shape
    if kh == 1 and kw == 1 and stride == 1 and pad == 0:
        patches = x_nhwc.reshape(N * H * W, Cin)
        Ho, Wo = H, W
    else:
        patches, Ho, Wo = _im2col(x_nhwc, kh, stride, pad)
    w_mat = jnp.transpose(weight, (2, 3, 1, 0)).reshape(kh * kw * Cin, Cout)
    out = _matmul_bias(patches, w_mat, bias, out_dtype)
    return out.reshape(N, Ho, Wo, Cout)


def conv1x1_pair_pallas(x_nhwc, w1, b1, w2, b2, out_dtype=jnp.bfloat16):
    """Two back-to-back 1x1 convs fused into a single pallas_call."""
    N, H, W, Cin = x_nhwc.shape
    c1_out = w1.shape[0]
    c2_out = w2.shape[0]
    x_mat = x_nhwc.reshape(N * H * W, Cin)
    w1_mat = w1.reshape(c1_out, Cin).T          # (Cin, c1_out)
    w2_mat = w2.reshape(c2_out, c1_out).T       # (c1_out, c2_out)
    out = _fused_two_matmul_bias(x_mat, w1_mat, b1, w2_mat, b2, out_dtype)
    return out.reshape(N, H, W, c2_out)


def conv1x1_convtranspose_pallas(x_nhwc, w4, b4, wt, bt, n, out_dtype=jnp.float32):
    """1x1 conv followed by ConvTranspose2d(kernel=n, stride=n, pad=0), fused.

    PyTorch ConvTranspose weight layout: (Cin, Cout, n, n).  Each input pixel
    produces an n x n output block, so the op is a per-pixel matmul.
    """
    N, H, W, Cin = x_nhwc.shape
    c4_out = w4.shape[0]
    _, Cout, _, _ = wt.shape
    x_mat = x_nhwc.reshape(N * H * W, Cin)
    w4_mat = w4.reshape(c4_out, Cin).T                       # (Cin, c4_out)
    # (Cin_t, Cout, n, n) -> (Cin_t, n, n, Cout): matmul columns are (p, q, co),
    # so the post-matmul transpose only swaps middle axes with a contiguous
    # n*Cout inner chunk (lane-friendlier writeback).
    wt_mat = jnp.transpose(wt, (0, 2, 3, 1)).reshape(c4_out, n * n * Cout)
    bt_rep = jnp.tile(bt, n * n)                             # bias per (p, q, co)
    out = _fused_two_matmul_bias(x_mat, w4_mat, b4, wt_mat, bt_rep, out_dtype)
    out = out.reshape(N, H, W, n, n, Cout)
    out = jnp.transpose(out, (0, 1, 3, 2, 4, 5))             # (N, H, n, W, n, Cout)
    return out.reshape(N, H * n, W * n, Cout)


# ----------------------------- Up_n module -------------------------------------
def init_up_n_params(key, in_channels, n):
    """Deterministic init mimicking PyTorch defaults (uniform +/- 1/sqrt(fan_in))."""
    assert in_channels % n == 0
    i_c = in_channels // n
    assert i_c % 2 == 0
    params = []
    conv_cfgs = [
        (i_c, in_channels, 1),
        (i_c // 2, i_c, 1),
        (i_c // 2, i_c // 2, 3),
        (i_c, i_c // 2, 1),
    ]
    for (cout, cin, k) in conv_cfgs:
        key, kw_, kb_ = jax.random.split(key, 3)
        fan_in = cin * k * k
        bound = 1.0 / float(fan_in) ** 0.5
        w = jax.random.uniform(kw_, (cout, cin, k, k), jnp.float32, -bound, bound)
        b = jax.random.uniform(kb_, (cout,), jnp.float32, -bound, bound)
        params.append({"w": w, "b": b})
    # ConvTranspose2d: weight (Cin, Cout, n, n)
    key, kw_, kb_ = jax.random.split(key, 3)
    cin = cout = i_c
    bound = 1.0 / float(cin * n * n) ** 0.5
    w = jax.random.uniform(kw_, (cin, cout, n, n), jnp.float32, -bound, bound)
    b = jax.random.uniform(kb_, (cout,), jnp.float32, -bound, bound)
    params.append({"w": w, "b": b})
    return params


@functools.partial(jax.jit, static_argnames=("n",))
def up_n_forward(x_nchw, params, *, n):
    """Forward pass of Up_n.  Input/output in NCHW, matching PyTorch."""
    x = jnp.transpose(x_nchw, (0, 2, 3, 1))  # NCHW -> NHWC (once; NHWC inside)
    # conv1 + conv2 (both 1x1) fused -> bf16 intermediate.
    x = conv1x1_pair_pallas(x, params[0]["w"], params[0]["b"],
                            params[1]["w"], params[1]["b"],
                            out_dtype=jnp.bfloat16)
    # conv3: 3x3, pad 1 -> bf16 intermediate.
    x = conv2d_pallas(x, params[2]["w"], params[2]["b"], stride=1, pad=1,
                      out_dtype=jnp.bfloat16)
    # conv4 (1x1) + ConvTranspose2d(n, n) fused -> f32 final output.
    x = conv1x1_convtranspose_pallas(x, params[3]["w"], params[3]["b"],
                                     params[4]["w"], params[4]["b"], n,
                                     out_dtype=jnp.float32)
    return jnp.transpose(x, (0, 3, 1, 2))  # NHWC -> NCHW


# ----------------------------- reference (for sanity) --------------------------
def up_n_reference(x_nchw, params, n):
    x = x_nchw
    for p in params[:4]:
        k = p["w"].shape[-1]
        pad = (k - 1) // 2
        x = jax.lax.conv_general_dilated(
            x, p["w"],
            window_strides=(1, 1),
            padding=[(pad, pad), (pad, pad)],
            dimension_numbers=("NCHW", "OIHW", "NCHW"),
        ) + p["b"].reshape(1, -1, 1, 1)
    w = params[4]["w"]  # (Cin, Cout, n, n)
    b = params[4]["b"]
    N, Cin, H, W = x.shape
    Cout = w.shape[1]
    y = jnp.einsum("bchw,cdpq->bdhpwq", x, w)
    y = y.reshape(N, Cout, H * n, W * n) + b.reshape(1, -1, 1, 1)
    return y


if __name__ == "__main__":
    key = jax.random.PRNGKey(0)
    key_x, key_p = jax.random.split(key)

    in_channels, n = 8, 2            # i_c = 4, i_c // 2 = 2
    x = jax.random.normal(key_x, (2, in_channels, 16, 16), jnp.float32)  # NCHW

    params = init_up_n_params(key_p, in_channels, n)

    out = up_n_forward(x, params, n=n)
    out = jax.block_until_ready(out)

    i_c = in_channels // n
    # Spatial stays 16x16 through the convs, then upsampled by n; channels end at i_c.
    assert out.shape == (2, i_c, 16 * n, 16 * n), out.shape

    ref = up_n_reference(x, params, n)
    # bf16 MXU inputs / bf16 intermediates with f32 accumulation -> relaxed tolerance.
    assert jnp.allclose(out, ref, atol=5e-2, rtol=5e-2), float(
        jnp.max(jnp.abs(out - ref))
    )

    print("KERNEL_OK")
</pallas_src>

<mosaic_0001>
module attributes {stable_mosaic.version = 11 : i64} {
  func.func @_fused2_kernel(%arg0: i32, %arg1: i32, %arg2: memref<256x128xbf16, #tpu.memory_space<vmem>>, %arg3: memref<128x128xbf16, #tpu.memory_space<vmem>>, %arg4: memref<1x128xf32, #tpu.memory_space<vmem>>, %arg5: memref<128x128xbf16, #tpu.memory_space<vmem>>, %arg6: memref<1x128xf32, #tpu.memory_space<vmem>>, %arg7: memref<256x128xbf16, #tpu.memory_space<vmem>>) attributes {dimension_semantics = [#tpu.dimension_semantics<parallel>, #tpu.dimension_semantics<parallel>], iteration_bounds = array<i64: 2, 1>, scalar_prefetch = 0 : i64, scratch_operands = 0 : i64, tpu.core_type = #tpu.core_type<tc>, window_params = [{transform_indices = @transform_0, window_bounds = array<i64: 256, 128>}, {pipeline_mode = #tpu.pipeline_mode<synchronous>, transform_indices = @transform_1, window_bounds = array<i64: 128, 128>}, {pipeline_mode = #tpu.pipeline_mode<synchronous>, transform_indices = @transform_2, window_bounds = array<i64: 1, 128>}, {transform_indices = @transform_3, window_bounds = array<i64: 128, 128>}, {transform_indices = @transform_4, window_bounds = array<i64: 1, 128>}, {transform_indices = @transform_5, window_bounds = array<i64: 256, 128>}]} {
    %c0 = arith.constant 0 : index
    %c0_0 = arith.constant 0 : index
    %0 = vector.load %arg2[%c0, %c0_0] : memref<256x128xbf16, #tpu.memory_space<vmem>>, vector<256x128xbf16>
    %c0_1 = arith.constant 0 : index
    %c0_2 = arith.constant 0 : index
    %1 = vector.load %arg3[%c0_1, %c0_2] : memref<128x128xbf16, #tpu.memory_space<vmem>>, vector<128x128xbf16>
    %cst = arith.constant dense<0.000000e+00> : vector<256x128xf32>
    %2 = tpu.matmul %0, %1, %cst {dimension_numbers = #tpu.dot_dimension_numbers<[1], [0], [0], [1], [0, 0, 1, 1], [], []>} : vector<256x128xbf16>, vector<128x128xbf16>, vector<256x128xf32> -> vector<256x128xf32>
    %c0_3 = arith.constant 0 : index
    %c0_4 = arith.constant 0 : index
    %3 = vector.load %arg4[%c0_3, %c0_4] : memref<1x128xf32, #tpu.memory_space<vmem>>, vector<1x128xf32>
    %4 = vector.broadcast %3 : vector<1x128xf32> to vector<256x128xf32>
    %5 = arith.addf %2, %4 : vector<256x128xf32>
    %6 = arith.truncf %5 : vector<256x128xf32> to vector<256x128xbf16>
    %c0_5 = arith.constant 0 : index
    %c0_6 = arith.constant 0 : index
    %7 = vector.load %arg5[%c0_5, %c0_6] : memref<128x128xbf16, #tpu.memory_space<vmem>>, vector<128x128xbf16>
    %cst_7 = arith.constant dense<0.000000e+00> : vector<256x128xf32>
    %8 = tpu.matmul %6, %7, %cst_7 {dimension_numbers = #tpu.dot_dimension_numbers<[1], [0], [0], [1], [0, 0, 1, 1], [], []>} : vector<256x128xbf16>, vector<128x128xbf16>, vector<256x128xf32> -> vector<256x128xf32>
    %c0_8 = arith.constant 0 : index
    %c0_9 = arith.constant 0 : index
    %9 = vector.load %arg6[%c0_8, %c0_9] : memref<1x128xf32, #tpu.memory_space<vmem>>, vector<1x128xf32>
    %10 = vector.broadcast %9 : vector<1x128xf32> to vector<256x128xf32>
    %11 = arith.addf %8, %10 : vector<256x128xf32>
    %12 = arith.truncf %11 : vector<256x128xf32> to vector<256x128xbf16>
    %c0_10 = arith.constant 0 : index
    %c0_11 = arith.constant 0 : index
    %13 = vector.load %arg7[%c0_10, %c0_11] : memref<256x128xbf16, #tpu.memory_space<vmem>>, vector<256x128xbf16>
    tpu.vector_store %arg7[%c0_10, %c0_11], %12 {strides = array<i32>} : memref<256x128xbf16, #tpu.memory_space<vmem>>, vector<256x128xbf16>,
    return
  }
  func.func @transform_0(%arg0: i32, %arg1: i32) -> (i32, i32) {
    %c0_i32 = arith.constant 0 : i32
    %c0_i32_0 = arith.constant 0 : i32
    return %arg0, %c0_i32 : i32, i32
  }
  func.func @transform_1(%arg0: i32, %arg1: i32) -> (i32, i32) {
    %c0_i32 = arith.constant 0 : i32
    %c0_i32_0 = arith.constant 0 : i32
    %c0_i32_1 = arith.constant 0 : i32
    return %c0_i32, %c0_i32_0 : i32, i32
  }
  func.func @transform_2(%arg0: i32, %arg1: i32) -> (i32, i32) {
    %c0_i32 = arith.constant 0 : i32
    %c0_i32_0 = arith.constant 0 : i32
    %c0_i32_1 = arith.constant 0 : i32
    return %c0_i32, %c0_i32_0 : i32, i32
  }
  func.func @transform_3(%arg0: i32, %arg1: i32) -> (i32, i32) {
    %c0_i32 = arith.constant 0 : i32
    %c0_i32_0 = arith.constant 0 : i32
    return %c0_i32, %arg1 : i32, i32
  }
  func.func @transform_4(%arg0: i32, %arg1: i32) -> (i32, i32) {
    %c0_i32 = arith.constant 0 : i32
    %c0_i32_0 = arith.constant 0 : i32
    return %c0_i32, %arg1 : i32, i32
  }
  func.func @transform_5(%arg0: i32, %arg1: i32) -> (i32, i32) {
    %c0_i32 = arith.constant 0 : i32
    return %arg0, %arg1 : i32, i32
  }
}

module attributes {stable_mosaic.version = 11 : i64} {
  func.func @_mm_bias_kernel(%arg0: i32, %arg1: i32, %arg2: memref<256x128xbf16, #tpu.memory_space<vmem>>, %arg3: memref<128x128xbf16, #tpu.memory_space<vmem>>, %arg4: memref<1x128xf32, #tpu.memory_space<vmem>>, %arg5: memref<256x128xbf16, #tpu.memory_space<vmem>>) attributes {dimension_semantics = [#tpu.dimension_semantics<parallel>, #tpu.dimension_semantics<parallel>], iteration_bounds = array<i64: 2, 1>, scalar_prefetch = 0 : i64, scratch_operands = 0 : i64, tpu.core_type = #tpu.core_type<tc>, window_params = [{transform_indices = @transform_0, window_bounds = array<i64: 256, 128>}, {transform_indices = @transform_1, window_bounds = array<i64: 128, 128>}, {transform_indices = @transform_2, window_bounds = array<i64: 1, 128>}, {transform_indices = @transform_3, window_bounds = array<i64: 256, 128>}]} {
    %c0 = arith.constant 0 : index
    %c0_0 = arith.constant 0 : index
    %0 = vector.load %arg2[%c0, %c0_0] : memref<256x128xbf16, #tpu.memory_space<vmem>>, vector<256x128xbf16>
    %c0_1 = arith.constant 0 : index
    %c0_2 = arith.constant 0 : index
    %1 = vector.load %arg3[%c0_1, %c0_2] : memref<128x128xbf16, #tpu.memory_space<vmem>>, vector<128x128xbf16>
    %cst = arith.constant dense<0.000000e+00> : vector<256x128xf32>
    %2 = tpu.matmul %0, %1, %cst {dimension_numbers = #tpu.dot_dimension_numbers<[1], [0], [0], [1], [0, 0, 1, 1], [], []>} : vector<256x128xbf16>, vector<128x128xbf16>, vector<256x128xf32> -> vector<256x128xf32>
    %c0_3 = arith.constant 0 : index
    %c0_4 = arith.constant 0 : index
    %3 = vector.load %arg4[%c0_3, %c0_4] : memref<1x128xf32, #tpu.memory_space<vmem>>, vector<1x128xf32>
    %4 = vector.broadcast %3 : vector<1x128xf32> to vector<256x128xf32>
    %5 = arith.addf %2, %4 : vector<256x128xf32>
    %6 = arith.truncf %5 : vector<256x128xf32> to vector<256x128xbf16>
    %c0_5 = arith.constant 0 : index
    %c0_6 = arith.constant 0 : index
    %7 = vector.load %arg5[%c0_5, %c0_6] : memref<256x128xbf16, #tpu.memory_space<vmem>>, vector<256x128xbf16>
    tpu.vector_store %arg5[%c0_5, %c0_6], %6 {strides = array<i32>} : memref<256x128xbf16, #tpu.memory_space<vmem>>, vector<256x128xbf16>,
    return
  }
  func.func @transform_0(%arg0: i32, %arg1: i32) -> (i32, i32) {
    %c0_i32 = arith.constant 0 : i32
    %c0_i32_0 = arith.constant 0 : i32
    return %arg0, %c0_i32 : i32, i32
  }
  func.func @transform_1(%arg0: i32, %arg1: i32) -> (i32, i32) {
    %c0_i32 = arith.constant 0 : i32
    %c0_i32_0 = arith.constant 0 : i32
    return %c0_i32, %arg1 : i32, i32
  }
  func.func @transform_2(%arg0: i32, %arg1: i32) -> (i32, i32) {
    %c0_i32 = arith.constant 0 : i32
    %c0_i32_0 = arith.constant 0 : i32
    return %c0_i32, %arg1 : i32, i32
  }
  func.func @transform_3(%arg0: i32, %arg1: i32) -> (i32, i32) {
    %c0_i32 = arith.constant 0 : i32
    return %arg0, %arg1 : i32, i32
  }
}

module attributes {stable_mosaic.version = 11 : i64} {
  func.func @_fused2_kernel(%arg0: i32, %arg1: i32, %arg2: memref<256x128xbf16, #tpu.memory_space<vmem>>, %arg3: memref<128x128xbf16, #tpu.memory_space<vmem>>, %arg4: memref<1x128xf32, #tpu.memory_space<vmem>>, %arg5: memref<128x128xbf16, #tpu.memory_space<vmem>>, %arg6: memref<1x128xf32, #tpu.memory_space<vmem>>, %arg7: memref<256x128xf32, #tpu.memory_space<vmem>>) attributes {dimension_semantics = [#tpu.dimension_semantics<parallel>, #tpu.dimension_semantics<parallel>], iteration_bounds = array<i64: 2, 1>, scalar_prefetch = 0 : i64, scratch_operands = 0 : i64, tpu.core_type = #tpu.core_type<tc>, window_params = [{transform_indices = @transform_0, window_bounds = array<i64: 256, 128>}, {pipeline_mode = #tpu.pipeline_mode<synchronous>, transform_indices = @transform_1, window_bounds = array<i64: 128, 128>}, {pipeline_mode = #tpu.pipeline_mode<synchronous>, transform_indices = @transform_2, window_bounds = array<i64: 1, 128>}, {transform_indices = @transform_3, window_bounds = array<i64: 128, 128>}, {transform_indices = @transform_4, window_bounds = array<i64: 1, 128>}, {transform_indices = @transform_5, window_bounds = array<i64: 256, 128>}]} {
    %c0 = arith.constant 0 : index
    %c0_0 = arith.constant 0 : index
    %0 = vector.load %arg2[%c0, %c0_0] : memref<256x128xbf16, #tpu.memory_space<vmem>>, vector<256x128xbf16>
    %c0_1 = arith.constant 0 : index
    %c0_2 = arith.constant 0 : index
    %1 = vector.load %arg3[%c0_1, %c0_2] : memref<128x128xbf16, #tpu.memory_space<vmem>>, vector<128x128xbf16>
    %cst = arith.constant dense<0.000000e+00> : vector<256x128xf32>
    %2 = tpu.matmul %0, %1, %cst {dimension_numbers = #tpu.dot_dimension_numbers<[1], [0], [0], [1], [0, 0, 1, 1], [], []>} : vector<256x128xbf16>, vector<128x128xbf16>, vector<256x128xf32> -> vector<256x128xf32>
    %c0_3 = arith.constant 0 : index
    %c0_4 = arith.constant 0 : index
    %3 = vector.load %arg4[%c0_3, %c0_4] : memref<1x128xf32, #tpu.memory_space<vmem>>, vector<1x128xf32>
    %4 = vector.broadcast %3 : vector<1x128xf32> to vector<256x128xf32>
    %5 = arith.addf %2, %4 : vector<256x128xf32>
    %6 = arith.truncf %5 : vector<256x128xf32> to vector<256x128xbf16>
    %c0_5 = arith.constant 0 : index
    %c0_6 = arith.constant 0 : index
    %7 = vector.load %arg5[%c0_5, %c0_6] : memref<128x128xbf16, #tpu.memory_space<vmem>>, vector<128x128xbf16>
    %cst_7 = arith.constant dense<0.000000e+00> : vector<256x128xf32>
    %8 = tpu.matmul %6, %7, %cst_7 {dimension_numbers = #tpu.dot_dimension_numbers<[1], [0], [0], [1], [0, 0, 1, 1], [], []>} : vector<256x128xbf16>, vector<128x128xbf16>, vector<256x128xf32> -> vector<256x128xf32>
    %c0_8 = arith.constant 0 : index
    %c0_9 = arith.constant 0 : index
    %9 = vector.load %arg6[%c0_8, %c0_9] : memref<1x128xf32, #tpu.memory_space<vmem>>, vector<1x128xf32>
    %10 = vector.broadcast %9 : vector<1x128xf32> to vector<256x128xf32>
    %11 = arith.addf %8, %10 : vector<256x128xf32>
    %c0_10 = arith.constant 0 : index
    %c0_11 = arith.constant 0 : index
    %12 = vector.load %arg7[%c0_10, %c0_11] : memref<256x128xf32, #tpu.memory_space<vmem>>, vector<256x128xf32>
    tpu.vector_store %arg7[%c0_10, %c0_11], %11 {strides = array<i32>} : memref<256x128xf32, #tpu.memory_space<vmem>>, vector<256x128xf32>,
    return
  }
  func.func @transform_0(%arg0: i32, %arg1: i32) -> (i32, i32) {
    %c0_i32 = arith.constant 0 : i32
    %c0_i32_0 = arith.constant 0 : i32
    return %arg0, %c0_i32 : i32, i32
  }
  func.func @transform_1(%arg0: i32, %arg1: i32) -> (i32, i32) {
    %c0_i32 = arith.constant 0 : i32
    %c0_i32_0 = arith.constant 0 : i32
    %c0_i32_1 = arith.constant 0 : i32
    return %c0_i32, %c0_i32_0 : i32, i32
  }
  func.func @transform_2(%arg0: i32, %arg1: i32) -> (i32, i32) {
    %c0_i32 = arith.constant 0 : i32
    %c0_i32_0 = arith.constant 0 : i32
    %c0_i32_1 = arith.constant 0 : i32
    return %c0_i32, %c0_i32_0 : i32, i32
  }
  func.func @transform_3(%arg0: i32, %arg1: i32) -> (i32, i32) {
    %c0_i32 = arith.constant 0 : i32
    %c0_i32_0 = arith.constant 0 : i32
    return %c0_i32, %arg1 : i32, i32
  }
  func.func @transform_4(%arg0: i32, %arg1: i32) -> (i32, i32) {
    %c0_i32 = arith.constant 0 : i32
    %c0_i32_0 = arith.constant 0 : i32
    return %c0_i32, %arg1 : i32, i32
  }
  func.func @transform_5(%arg0: i32, %arg1: i32) -> (i32, i32) {
    %c0_i32 = arith.constant 0 : i32
    return %arg0, %arg1 : i32, i32
  }
}

</mosaic_0001>

<bundles_post_ra>
// kernel: up_n_forward.4
= control target key start
LH: loop header
LB: loop body
LE: loop exit
PB: predicated region body
PF: predicated region fallthrough
CT: control target
= control target key end

     0   :  { %s1225_s12 = smov 0   ;;  %s1227_s13 = smov 0   ;;  %s1362_s0 = inlined_call_operand.vmem [shape: bf16[512,128], index: 0, kind: input, shape index: {}]   ;;  %s1363_s1 = inlined_call_operand.vmem [shape: bf16[128,128], index: 1, kind: input, shape index: {}]   ;;  %s1364_s2 = inlined_call_operand.vmem [shape: f32[1,128], index: 2, kind: input, shape index: {}]   ;;  %s1365_s3 = inlined_call_operand.vmem [shape: bf16[512,128], index: 3, kind: output, shape index: {}]  }
   0x1   :  { %s1229_s14 = smov 0  }
   0x2 LB: > { %s25_s15 = sadd.s32 1, %s1199_s13  ;;  %p854_p0 = scmp.ge.s32.totalorder %s1203_s14, 1  ;;  %s1203_s14 = sphi %s1229_s14, %s13_s14   ;;  %s1199_s13 = sphi %s1227_s13, %s1367_s13   ;;  %s1195_s12 = sphi %s1225_s12, %s1366_s12  }
   0x3   : > { %p27_p1 = scmp.ge.s32.totalorder %s25_s15, 2  ;;  %p169_p2 = scmp.lt.s32.totalorder %s1203_s14, 3 }
   0x5   : > { %s1369_s15 = smov (%p27_p1, %s25_s15), 0  ;;  %p170_p3 = pnand %p854_p0, %p169_p2 }
   0x6   : > { %v1157_v0 = vld [vmem:[%s1363_s1] sm:$0xff] (!%p170_p3)   ;;  %s855_s18 = sshll.u32 (!%p170_p3), %s1195_s12, 5  ;;  %v1158_v1 = vld [vmem:[%s1363_s1 + $0x8] sm:$0xff] (!%p170_p3)   ;;  %v1159_v2 = vld [vmem:[%s1363_s1 + $0x10] sm:$0xff] (!%p170_p3)  }
   0x7   : > { %173 = sbr.rel (%p170_p3) target bundleno = 283 (0x11b), region = 32  ;;  %p204_p4 = scmp.lt.s32.totalorder (!%p170_p3), %s855_s18, 63  ;;  %1069 = vmatprep.subr.bf16.mxu0 (!%p170_p3), %v1157_v0  ;;  %1117 = vmatprep.subr.bf16.mxu1 (!%p170_p3), %v1157_v0  ;;  %v1160_v3 = vld [vmem:[%s1363_s1 + $0x18] sm:$0xff] (!%p170_p3)   ;;  %v1161_v6 = vld [vmem:[%s1363_s1 + $0x20] sm:$0xff] (!%p170_p3)   ;;  %v1162_v7 = vld [vmem:[%s1363_s1 + $0x28] sm:$0xff] (!%p170_p3)  }
   0x8   : > { %1070 = vmatpush3.bf16.msra.mxu0 (!%p170_p3), %v1157_v0  ;;  %1125 = vmatpush3.bf16.msra.mxu1 (!%p170_p3), %v1157_v0  ;;  %v1163_v8 = vld [vmem:[%s1363_s1 + $0x30] sm:$0xff] (!%p170_p3)   ;;  %v1164_v9 = vld [vmem:[%s1363_s1 + $0x38] sm:$0xff] (!%p170_p3)   ;;  %v1296_v25 = vld [vmem:[%s1364_s2] ss:$0 sm:$0xff] (!%p170_p3) }
   0x9   : > { %1071 = vmatprep.subr.bf16.mxu0 (!%p170_p3), %v1158_v1  ;;  %1118 = vmatprep.subr.bf16.mxu1 (!%p170_p3), %v1158_v1 }
   0xc   : > { %1072 = vmatpush3.bf16.msra.mxu0 (!%p170_p3), %v1158_v1  ;;  %1126 = vmatpush3.bf16.msra.mxu1 (!%p170_p3), %v1158_v1 }
   0xd   : > { %1073 = vmatprep.subr.bf16.mxu0 (!%p170_p3), %v1159_v2  ;;  %1119 = vmatprep.subr.bf16.mxu1 (!%p170_p3), %v1159_v2 }
   0xe   : > { %s1371_s18 = smov (!%p204_p4, %s855_s18), 63 }
   0xf   : > { %s856_s23 = sshll.u32 %s1371_s18, 2 }
  0x10   : > { %s1260_s26 = scalar_lea.vmem %s1362_s0, %s856_s23  ;;  %1074 = vmatpush3.bf16.msra.mxu0 %v1159_v2  ;;  %1127 = vmatpush3.bf16.msra.mxu1 %v1159_v2  ;;  %s1309_s17 = scalar_lea.vmem %s1365_s3, %s856_s23 }
  0x11   : > { %v1165_v4 = vld [vmem:[%s1260_s26] sm:$0xff]   ;;  %1075 = vmatprep.subr.bf16.mxu0 %v1160_v3  ;;  %1120 = vmatprep.subr.bf16.mxu1 %v1160_v3  ;;  %v1167_v10 = vld [vmem:[%s1260_s26 + $0x8] sm:$0xff]   ;;  %v1169_v12 = vld [vmem:[%s1260_s26 + $0x10] sm:$0xff]  }
  0x12   : > { %v1166_v5 = vld [vmem:[%s1260_s26 + $0x40] sm:$0xff]   ;;  %1085 = vmatprep.mubr.bf16.mxu0 %v1165_v4  ;;  %v1168_v11 = vld [vmem:[%s1260_s26 + $0x48] sm:$0xff]   ;;  %v1170_v13 = vld [vmem:[%s1260_s26 + $0x50] sm:$0xff]  }
  0x13   : > { %1101 = vmatprep.mubr.bf16.mxu1 %v1166_v5  ;;  %v1171_v14 = vld [vmem:[%s1260_s26 + $0x18] sm:$0xff]   ;;  %v1173_v16 = vld [vmem:[%s1260_s26 + $0x20] sm:$0xff]   ;;  %v1175_v18 = vld [vmem:[%s1260_s26 + $0x28] sm:$0xff]  }
  0x14   : > { %1076 = vmatpush3.bf16.msra.mxu0 %v1160_v3  ;;  %1128 = vmatpush3.bf16.msra.mxu1 %v1160_v3  ;;  %v1172_v15 = vld [vmem:[%s1260_s26 + $0x58] sm:$0xff]   ;;  %v1174_v17 = vld [vmem:[%s1260_s26 + $0x60] sm:$0xff]   ;;  %v1176_v19 = vld [vmem:[%s1260_s26 + $0x68] sm:$0xff]  }
  0x15   : > { %1077 = vmatprep.subr.bf16.mxu0 %v1161_v6  ;;  %1121 = vmatprep.subr.bf16.mxu1 %v1161_v6  ;;  %v1177_v20 = vld [vmem:[%s1260_s26 + $0x30] sm:$0xff]   ;;  %v1179_v22 = vld [vmem:[%s1260_s26 + $0x38] sm:$0xff]  }
  0x16   : > { %v1178_v21 = vld [vmem:[%s1260_s26 + $0x70] sm:$0xff]   ;;  %v1180_v23 = vld [vmem:[%s1260_s26 + $0x78] sm:$0xff]  }
  0x18   : > { %1078 = vmatpush3.bf16.msra.mxu0 %v1161_v6  ;;  %1129 = vmatpush3.bf16.msra.mxu1 %v1161_v6 }
  0x19   : > { %1079 = vmatprep.subr.bf16.mxu0 %v1162_v7  ;;  %1122 = vmatprep.subr.bf16.mxu1 %v1162_v7 }
  0x1c   : > { %1080 = vmatpush3.bf16.msra.mxu0 %v1162_v7  ;;  %1130 = vmatpush3.bf16.msra.mxu1 %v1162_v7 }
  0x1d   : > { %1081 = vmatprep.subr.bf16.mxu0 %v1163_v8  ;;  %1123 = vmatprep.subr.bf16.mxu1 %v1163_v8 }
  0x20   : > { %1082 = vmatpush3.bf16.msra.mxu0 %v1163_v8  ;;  %1131 = vmatpush3.bf16.msra.mxu1 %v1163_v8 }
  0x21   : > { %1083 = vmatprep.subr.bf16.mxu0 %v1164_v9  ;;  %1124 = vmatprep.subr.bf16.mxu1 %v1164_v9 }
  0x24   : > { %1084 = vmatpush3.bf16.msra.mxu0 %v1164_v9  ;;  %1132 = vmatpush3.bf16.msra.mxu1 %v1164_v9 }
  0x27   : > { %1086 = vmatmul.mubr.bf16.vlgmr.msra.gmra.mrb[0].mxu0 %v1167_v10  ;;  %1102 = vmatmul.mubr.bf16.vlgmr.msra.gmra.mrb[0].mxu1 %v1168_v11 }
  0x28   : > { %1089 = vmatprep.mubr.bf16.mxu0 %v1169_v12  ;;  %1105 = vmatprep.mubr.bf16.mxu1 %v1170_v13 }
  0x2f   : > { %1090 = vmatmul.mubr.bf16.gmra.mrb[4].mxu0 %v1171_v14  ;;  %1106 = vmatmul.mubr.bf16.gmra.mrb[4].mxu1 %v1172_v15 }
  0x30   : > { %1093 = vmatprep.mubr.bf16.mxu0 %v1173_v16  ;;  %1109 = vmatprep.mubr.bf16.mxu1 %v1174_v17 }
  0x37   : > { %1094 = vmatmul.mubr.bf16.gmra.mrb[8].mxu0 %v1175_v18  ;;  %1110 = vmatmul.mubr.bf16.gmra.mrb[8].mxu1 %v1176_v19 }
  0x38   : > { %1097 = vmatprep.mubr.bf16.mxu0 %v1177_v20  ;;  %1113 = vmatprep.mubr.bf16.mxu1 %v1178_v21 }
  0x3f   : > { %1098 = vmatmul.mubr.bf16.gmra.mrb[12].mxu0 %v1179_v22  ;;  %1114 = vmatmul.mubr.bf16.gmra.mrb[12].mxu1 %v1180_v23 }
  0xfa   : > { %v1087_v24 = vpop.f32.mrb[0].mxu0  ;;  %v1103_v26 = vpop.f32.mrb[0].mxu1 }
  0xfb   : > { %v459_v27 = vpop.f32.mrb[1].mxu0  ;;  %v523_v28 = vpop.f32.mrb[1].mxu1  ;;  %v468_v31 = vadd.f32 %v1087_v24, %v1296_v25  ;;  %v532_v32 = vadd.f32 %v1103_v26, %v1296_v25 }
  0xfc   : > { %v1088_v29 = vpop.f32.mrb[2].mxu0  ;;  %v1104_v30 = vpop.f32.mrb[2].mxu1  ;;  %v460_v37 = vadd.f32 %v1296_v25, %v459_v27  ;;  %v524_v38 = vadd.f32 %v1296_v25, %v523_v28 }
  0xfd   : > { %v471_v33 = vadd.f32 %v1088_v29, %v1296_v25  ;;  %v535_v34 = vadd.f32 %v1104_v30, %v1296_v25  ;;  %v462_v35 = vpop.f32.mrb[3].mxu0  ;;  %v526_v36 = vpop.f32.mrb[3].mxu1 }
  0xfe   : > { %v463_v39 = vadd.f32 %v1296_v25, %v462_v35  ;;  %v527_v40 = vadd.f32 %v1296_v25, %v526_v36 }
  0xff   : > { %v958_v41 = vpack.c.bf16 %v471_v33, %v468_v31  ;;  %v998_v42 = vpack.c.bf16 %v535_v34, %v532_v32 }
 0x100   : > { %v953_v43 = vpack.c.bf16 %v463_v39, %v460_v37  ;;  %v993_v44 = vpack.c.bf16 %v527_v40, %v524_v38 }
 0x101   : > { %1030 = vst [vmem:[%s1309_s17 + $0x8] sm:$0xff] %v958_v41   ;;  %1038 = vst [vmem:[%s1309_s17 + $0x48] sm:$0xff] %v998_v42  }
 0x102   : > { %954 = vst [vmem:[%s1309_s17] sm:$0xff] %v953_v43   ;;  %1037 = vst [vmem:[%s1309_s17 + $0x40] sm:$0xff] %v993_v44   ;;  %v1091_v45 = vpop.f32.mrb[4].mxu0  ;;  %v1107_v46 = vpop.f32.mrb[4].mxu1 }
 0x103   : > { %v475_v47 = vpop.f32.mrb[5].mxu0  ;;  %v539_v48 = vpop.f32.mrb[5].mxu1  ;;  %v484_v51 = vadd.f32 %v1091_v45, %v1296_v25  ;;  %v548_v52 = vadd.f32 %v1107_v46, %v1296_v25 }
 0x104   : > { %v1092_v49 = vpop.f32.mrb[6].mxu0  ;;  %v1108_v50 = vpop.f32.mrb[6].mxu1  ;;  %v476_v57 = vadd.f32 %v1296_v25, %v475_v47  ;;  %v540_v58 = vadd.f32 %v1296_v25, %v539_v48 }
 0x105   : > { %v487_v53 = vadd.f32 %v1092_v49, %v1296_v25  ;;  %v551_v54 = vadd.f32 %v1108_v50, %v1296_v25  ;;  %v478_v55 = vpop.f32.mrb[7].mxu0  ;;  %v542_v56 = vpop.f32.mrb[7].mxu1 }
 0x106   : > { %v479_v59 = vadd.f32 %v1296_v25, %v478_v55  ;;  %v543_v60 = vadd.f32 %v1296_v25, %v542_v56 }
 0x107   : > { %v968_v61 = vpack.c.bf16 %v487_v53, %v484_v51  ;;  %v1008_v62 = vpack.c.bf16 %v551_v54, %v548_v52 }
 0x108   : > { %v963_v63 = vpack.c.bf16 %v479_v59, %v476_v57  ;;  %v1003_v0 = vpack.c.bf16 %v543_v60, %v540_v58 }
 0x109   : > { %1032 = vst [vmem:[%s1309_s17 + $0x18] sm:$0xff] %v968_v61   ;;  %1040 = vst [vmem:[%s1309_s17 + $0x58] sm:$0xff] %v1008_v62  }
 0x10a   : > { %1031 = vst [vmem:[%s1309_s17 + $0x10] sm:$0xff] %v963_v63   ;;  %1039 = vst [vmem:[%s1309_s17 + $0x50] sm:$0xff] %v1003_v0   ;;  %v1095_v1 = vpop.f32.mrb[8].mxu0  ;;  %v1111_v2 = vpop.f32.mrb[8].mxu1 }
 0x10b   : > { %v491_v3 = vpop.f32.mrb[9].mxu0  ;;  %v555_v4 = vpop.f32.mrb[9].mxu1  ;;  %v500_v7 = vadd.f32 %v1095_v1, %v1296_v25  ;;  %v564_v8 = vadd.f32 %v1111_v2, %v1296_v25 }
 0x10c   : > { %v1096_v5 = vpop.f32.mrb[10].mxu0  ;;  %v1112_v6 = vpop.f32.mrb[10].mxu1  ;;  %v492_v13 = vadd.f32 %v1296_v25, %v491_v3  ;;  %v556_v14 = vadd.f32 %v1296_v25, %v555_v4 }
 0x10d   : > { %v503_v9 = vadd.f32 %v1096_v5, %v1296_v25  ;;  %v567_v10 = vadd.f32 %v1112_v6, %v1296_v25  ;;  %v494_v11 = vpop.f32.mrb[11].mxu0  ;;  %v558_v12 = vpop.f32.mrb[11].mxu1 }
 0x10e   : > { %v495_v15 = vadd.f32 %v1296_v25, %v494_v11  ;;  %v559_v16 = vadd.f32 %v1296_v25, %v558_v12 }
 0x10f   : > { %v978_v17 = vpack.c.bf16 %v503_v9, %v500_v7  ;;  %v1018_v18 = vpack.c.bf16 %v567_v10, %v564_v8 }
 0x110   : > { %v973_v19 = vpack.c.bf16 %v495_v15, %v492_v13  ;;  %v1013_v20 = vpack.c.bf16 %v559_v16, %v556_v14 }
 0x111   : > { %1034 = vst [vmem:[%s1309_s17 + $0x28] sm:$0xff] %v978_v17   ;;  %1042 = vst [vmem:[%s1309_s17 + $0x68] sm:$0xff] %v1018_v18  }
 0x112   : > { %1033 = vst [vmem:[%s1309_s17 + $0x20] sm:$0xff] %v973_v19   ;;  %1041 = vst [vmem:[%s1309_s17 + $0x60] sm:$0xff] %v1013_v20   ;;  %v1099_v21 = vpop.f32.mrb[12].mxu0  ;;  %v1115_v22 = vpop.f32.mrb[12].mxu1 }
 0x113   : > { %v507_v23 = vpop.f32.mrb[13].mxu0  ;;  %v571_v24 = vpop.f32.mrb[13].mxu1  ;;  %v516_v28 = vadd.f32 %v1099_v21, %v1296_v25  ;;  %v580_v29 = vadd.f32 %v1115_v22, %v1296_v25 }
 0x114   : > { %v1100_v26 = vpop.f32.mrb[14].mxu0  ;;  %v1116_v27 = vpop.f32.mrb[14].mxu1  ;;  %v508_v34 = vadd.f32 %v1296_v25, %v507_v23  ;;  %v572_v35 = vadd.f32 %v1296_v25, %v571_v24 }
 0x115   : > { %v519_v30 = vadd.f32 %v1100_v26, %v1296_v25  ;;  %v583_v31 = vadd.f32 %v1116_v27, %v1296_v25  ;;  %v510_v32 = vpop.f32.mrb[15].mxu0  ;;  %v574_v33 = vpop.f32.mrb[15].mxu1 }
 0x116   : > { %v511_v36 = vadd.f32 %v1296_v25, %v510_v32  ;;  %v575_v37 = vadd.f32 %v1296_v25, %v574_v33 }
 0x117   : > { %v988_v38 = vpack.c.bf16 %v519_v30, %v516_v28  ;;  %v1028_v39 = vpack.c.bf16 %v583_v31, %v580_v29 }
 0x118   : > { %v983_v40 = vpack.c.bf16 %v511_v36, %v508_v34  ;;  %v1023_v41 = vpack.c.bf16 %v575_v37, %v572_v35 }
 0x119   : > { %1036 = vst [vmem:[%s1309_s17 + $0x38] sm:$0xff] %v988_v38   ;;  %1044 = vst [vmem:[%s1309_s17 + $0x78] sm:$0xff] %v1028_v39  }
 0x11a   : > { %1035 = vst [vmem:[%s1309_s17 + $0x30] sm:$0xff] %v983_v40   ;;  %1043 = vst [vmem:[%s1309_s17 + $0x70] sm:$0xff] %v1023_v41  }
 0x11b PF: > { %s13_s14 = sadd.s32 1, %s1203_s14   ;;  %s1366_s12 = smov %s1199_s13 }
 0x11c   : > { %p10_p5 = scmp.ge.s32.totalorder %s13_s14, 4   ;;  %s1367_s13 = smov %s1369_s15 }
 0x11e   :  { %12 = sbr.rel (!%p10_p5) target bundleno = 2 (0x2), region = 68 }

// kernel: up_n_forward.3
= control target key start
LH: loop header
LB: loop body
LE: loop exit
PB: predicated region body
PF: predicated region fallthrough
CT: control target
= control target key end

     0   :  { %s1610_s18 = smov 0   ;;  %s1612_s19 = smov 0   ;;  %s1808_s0 = inlined_call_operand.vmem [shape: bf16[512,128], index: 0, kind: input, shape index: {}]   ;;  %s1809_s1 = inlined_call_operand.vmem [shape: bf16[128,128], index: 1, kind: input, shape index: {}]   ;;  %s1810_s2 = inlined_call_operand.vmem [shape: f32[1,128], index: 2, kind: input, shape index: {}]   ;;  %s1811_s3 = inlined_call_operand.vmem [shape: bf16[128,128], index: 3, kind: input, shape index: {}]   ;;  %s1812_s4 = inlined_call_operand.vmem [shape: f32[1,128], index: 4, kind: input, shape index: {}]   ;;  %s1813_s5 = inlined_call_operand.vmem [shape: bf16[512,128], index: 5, kind: output, shape index: {}]  }
   0x1   :  { %s1614_s20 = smov 0  }
   0x2 LB: > { %s27_s21 = sadd.s32 1, %s1574_s19  ;;  %p1156_p0 = scmp.ge.s32.totalorder %s1578_s20, 1  ;;  %s1578_s20 = sphi %s1614_s20, %s15_s20   ;;  %s1574_s19 = sphi %s1612_s19, %s1815_s19   ;;  %s1570_s18 = sphi %s1610_s18, %s1814_s18  }
   0x3   : > { %p29_p1 = scmp.ge.s32.totalorder %s27_s21, 2  ;;  %p219_p2 = scmp.lt.s32.totalorder %s1578_s20, 3 }
   0x5   : > { %s1817_s21 = smov (%p29_p1, %s27_s21), 0  ;;  %p220_p3 = pnand %p1156_p0, %p219_p2 }
   0x6   : > { %v1524_v0 = vld [vmem:[%s1809_s1] sm:$0xff] (!%p220_p3)   ;;  %s1157_s24 = sshll.u32 (!%p220_p3), %s1570_s18, 5  ;;  %v1525_v1 = vld [vmem:[%s1809_s1 + $0x8] sm:$0xff] (!%p220_p3)   ;;  %v1526_v2 = vld [vmem:[%s1809_s1 + $0x10] sm:$0xff] (!%p220_p3)  }
   0x7   : > { %223 = sbr.rel (%p220_p3) target bundleno = 535 (0x217), region = 40  ;;  %p258_p4 = scmp.lt.s32.totalorder (!%p220_p3), %s1157_s24, 63  ;;  %1404 = vmatprep.subr.bf16.mxu0 (!%p220_p3), %v1524_v0  ;;  %v1527_v3 = vld [vmem:[%s1809_s1 + $0x18] sm:$0xff] (!%p220_p3)   ;;  %v1528_v5 = vld [vmem:[%s1809_s1 + $0x20] sm:$0xff] (!%p220_p3)   ;;  %v1529_v6 = vld [vmem:[%s1809_s1 + $0x28] sm:$0xff] (!%p220_p3)  }
   0x8   : > { %1405 = vmatpush3.bf16.msra.mxu0 (!%p220_p3), %v1524_v0  ;;  %v1530_v7 = vld [vmem:[%s1809_s1 + $0x30] sm:$0xff] (!%p220_p3)   ;;  %v1531_v8 = vld [vmem:[%s1809_s1 + $0x38] sm:$0xff] (!%p220_p3)   ;;  %v1548_v9 = vld [vmem:[%s1811_s3] sm:$0xff] (!%p220_p3)  }
   0x9   : > { %1406 = vmatprep.subr.bf16.mxu0 (!%p220_p3), %v1525_v1  ;;  %v1549_v10 = vld [vmem:[%s1811_s3 + $0x8] sm:$0xff] (!%p220_p3)   ;;  %1452 = vmatprep.subr.bf16.mxu1 (!%p220_p3), %v1548_v9  ;;  %v1550_v11 = vld [vmem:[%s1811_s3 + $0x10] sm:$0xff] (!%p220_p3)   ;;  %v1551_v14 = vld [vmem:[%s1811_s3 + $0x18] sm:$0xff] (!%p220_p3)  }
   0xa   : > { %1453 = vmatpush3.bf16.msra.mxu1 (!%p220_p3), %v1548_v9  ;;  %v1552_v15 = vld [vmem:[%s1811_s3 + $0x20] sm:$0xff] (!%p220_p3)   ;;  %v1553_v18 = vld [vmem:[%s1811_s3 + $0x28] sm:$0xff] (!%p220_p3)   ;;  %v1554_v30 = vld [vmem:[%s1811_s3 + $0x30] sm:$0xff] (!%p220_p3)  }
   0xb   : > { %1454 = vmatprep.subr.bf16.mxu1 (!%p220_p3), %v1549_v10  ;;  %v1555_v31 = vld [vmem:[%s1811_s3 + $0x38] sm:$0xff] (!%p220_p3)   ;;  %v1705_v33 = vld [vmem:[%s1810_s2] ss:$0 sm:$0xff] (!%p220_p3) }
   0xc   : > { %1407 = vmatpush3.bf16.msra.mxu0 (!%p220_p3), %v1525_v1 }
   0xd   : > { %1408 = vmatprep.subr.bf16.mxu0 (!%p220_p3), %v1526_v2 }
   0xe   : > { %s1819_s24 = smov (!%p258_p4, %s1157_s24), 63  ;;  %1455 = vmatpush3.bf16.msra.mxu1 %v1549_v10 }
   0xf   : > { %s1158_s29 = sshll.u32 %s1819_s24, 2  ;;  %1456 = vmatprep.subr.bf16.mxu1 %v1550_v11 }
  0x10   : > { %s1645_s7 = scalar_lea.vmem %s1808_s0, %s1158_s29  ;;  %1409 = vmatpush3.bf16.msra.mxu0 %v1526_v2  ;;  %s1752_s23 = scalar_lea.vmem %s1813_s5, %s1158_s29 }
  0x11   : > { %v1532_v4 = vld [vmem:[%s1645_s7] sm:$0xff]   ;;  %1410 = vmatprep.subr.bf16.mxu0 %v1527_v3  ;;  %v1533_v12 = vld [vmem:[%s1645_s7 + $0x8] sm:$0xff]   ;;  %v1534_v13 = vld [vmem:[%s1645_s7 + $0x10] sm:$0xff]  }
  0x12   : > { %1420 = vmatprep.mubr.bf16.mxu0 %v1532_v4  ;;  %1457 = vmatpush3.bf16.msra.mxu1 %v1550_v11  ;;  %v1535_v16 = vld [vmem:[%s1645_s7 + $0x18] sm:$0xff]   ;;  %v1536_v17 = vld [vmem:[%s1645_s7 + $0x20] sm:$0xff]   ;;  %v1537_v19 = vld [vmem:[%s1645_s7 + $0x28] sm:$0xff]  }
  0x13   : > { %1458 = vmatprep.subr.bf16.mxu1 %v1551_v14  ;;  %v1538_v20 = vld [vmem:[%s1645_s7 + $0x30] sm:$0xff]   ;;  %v1539_v21 = vld [vmem:[%s1645_s7 + $0x38] sm:$0xff]   ;;  %v1540_v22 = vld [vmem:[%s1645_s7 + $0x40] sm:$0xff]  }
  0x14   : > { %1411 = vmatpush3.bf16.msra.mxu0 %v1527_v3  ;;  %v1541_v23 = vld [vmem:[%s1645_s7 + $0x48] sm:$0xff]   ;;  %v1542_v24 = vld [vmem:[%s1645_s7 + $0x50] sm:$0xff]   ;;  %v1543_v25 = vld [vmem:[%s1645_s7 + $0x58] sm:$0xff]  }
  0x15   : > { %1412 = vmatprep.subr.bf16.mxu0 %v1528_v5  ;;  %v1544_v26 = vld [vmem:[%s1645_s7 + $0x60] sm:$0xff]   ;;  %v1545_v27 = vld [vmem:[%s1645_s7 + $0x68] sm:$0xff]   ;;  %v1546_v28 = vld [vmem:[%s1645_s7 + $0x70] sm:$0xff]  }
  0x16   : > { %1459 = vmatpush3.bf16.msra.mxu1 %v1551_v14  ;;  %v1547_v29 = vld [vmem:[%s1645_s7 + $0x78] sm:$0xff]  }
  0x17   : > { %1460 = vmatprep.subr.bf16.mxu1 %v1552_v15 }
  0x18   : > { %1413 = vmatpush3.bf16.msra.mxu0 %v1528_v5 }
  0x19   : > { %1414 = vmatprep.subr.bf16.mxu0 %v1529_v6 }
  0x1a   : > { %1461 = vmatpush3.bf16.msra.mxu1 %v1552_v15 }
  0x1b   : > { %1462 = vmatprep.subr.bf16.mxu1 %v1553_v18 }
  0x1c   : > { %1415 = vmatpush3.bf16.msra.mxu0 %v1529_v6 }
  0x1d   : > { %1416 = vmatprep.subr.bf16.mxu0 %v1530_v7 }
  0x1e   : > { %1463 = vmatpush3.bf16.msra.mxu1 %v1553_v18 }
  0x1f   : > { %1464 = vmatprep.subr.bf16.mxu1 %v1554_v30 }
  0x20   : > { %1417 = vmatpush3.bf16.msra.mxu0 %v1530_v7 }
  0x21   : > { %1418 = vmatprep.subr.bf16.mxu0 %v1531_v8 }
  0x22   : > { %1465 = vmatpush3.bf16.msra.mxu1 %v1554_v30 }
  0x23   : > { %1466 = vmatprep.subr.bf16.mxu1 %v1555_v31 }
  0x24   : > { %1419 = vmatpush3.bf16.msra.mxu0 %v1531_v8 }
  0x26   : > { %1467 = vmatpush3.bf16.msra.mxu1 %v1555_v31 }
  0x27   : > { %1421 = vmatmul.mubr.bf16.vlgmr.msra.gmra.mrb[0].mxu0 %v1533_v12 }
  0x28   : > { %1424 = vmatprep.mubr.bf16.mxu0 %v1534_v13 }
  0x2f   : > { %1425 = vmatmul.mubr.bf16.gmra.mrb[4].mxu0 %v1535_v16 }
  0x30   : > { %1428 = vmatprep.mubr.bf16.mxu0 %v1536_v17 }
  0x37   : > { %1429 = vmatmul.mubr.bf16.gmra.mrb[8].mxu0 %v1537_v19 }
  0x38   : > { %1432 = vmatprep.mubr.bf16.mxu0 %v1538_v20 }
  0x3f   : > { %1433 = vmatmul.mubr.bf16.gmra.mrb[12].mxu0 %v1539_v21 }
  0x40   : > { %1436 = vmatprep.mubr.bf16.mxu0 %v1540_v22 }
  0x47   : > { %1437 = vmatmul.mubr.bf16.gmra.mrb[16].mxu0 %v1541_v23 }
  0x48   : > { %1440 = vmatprep.mubr.bf16.mxu0 %v1542_v24 }
  0x4f   : > { %1441 = vmatmul.mubr.bf16.gmra.mrb[20].mxu0 %v1543_v25 }
  0x50   : > { %1444 = vmatprep.mubr.bf16.mxu0 %v1544_v26 }
  0x57   : > { %1445 = vmatmul.mubr.bf16.gmra.mrb[24].mxu0 %v1545_v27 }
  0x58   : > { %1448 = vmatprep.mubr.bf16.mxu0 %v1546_v28 }
  0x5f   : > { %1449 = vmatmul.mubr.bf16.gmra.mrb[28].mxu0 %v1547_v29 }
  0xfa   : > { %v1422_v32 = vpop.f32.mrb[0].mxu0 }
  0xfb   : > { %v513_v34 = vpop.f32.mrb[1].mxu0  ;;  %v522_v36 = vadd.f32 %v1422_v32, %v1705_v33 }
  0xfc   : > { %v1423_v35 = vpop.f32.mrb[2].mxu0  ;;  %v514_v39 = vadd.f32 %v1705_v33, %v513_v34 }
  0xfd   : > { %v525_v37 = vadd.f32 %v1423_v35, %v1705_v33  ;;  %v516_v38 = vpop.f32.mrb[3].mxu0 }
  0xfe   : > { %v517_v40 = vadd.f32 %v1705_v33, %v516_v38 }
  0xff   : > { %v641_v41 = vpack.c.bf16 %v525_v37, %v522_v36 }
 0x100   : > { %v640_v42 = vpack.c.bf16 %v517_v40, %v514_v39 }
 0x102   : > { %v1426_v43 = vpop.f32.mrb[4].mxu0  ;;  %1468 = vmatprep.mubr.bf16.mxu1 %v640_v42 }
 0x103   : > { %v529_v44 = vpop.f32.mrb[5].mxu0  ;;  %1469 = vmatmul.mubr.bf16.vlgmr.msra.gmra.mrb[0].mxu1 %v641_v41  ;;  %v538_v46 = vadd.f32 %v1426_v43, %v1705_v33 }
 0x104   : > { %v1427_v45 = vpop.f32.mrb[6].mxu0  ;;  %v530_v49 = vadd.f32 %v1705_v33, %v529_v44 }
 0x105   : > { %v541_v47 = vadd.f32 %v1427_v45, %v1705_v33  ;;  %v532_v48 = vpop.f32.mrb[7].mxu0 }
 0x106   : > { %v533_v50 = vadd.f32 %v1705_v33, %v532_v48 }
 0x107   : > { %v643_v51 = vpack.c.bf16 %v541_v47, %v538_v46 }
 0x108   : > { %v642_v52 = vpack.c.bf16 %v533_v50, %v530_v49 }
 0x10a   : > { %v1430_v53 = vpop.f32.mrb[8].mxu0  ;;  %1472 = vmatprep.mubr.bf16.mxu1 %v642_v52 }
 0x10b   : > { %v545_v54 = vpop.f32.mrb[9].mxu0  ;;  %1473 = vmatmul.mubr.bf16.gmra.mrb[4].mxu1 %v643_v51  ;;  %v554_v56 = vadd.f32 %v1430_v53, %v1705_v33  ;;  %v1742_v51 = vld [vmem:[%s1812_s4] ss:$0 sm:$0xff] }
 0x10c   : > { %v1431_v55 = vpop.f32.mrb[10].mxu0  ;;  %v546_v59 = vadd.f32 %v1705_v33, %v545_v54 }
 0x10d   : > { %v557_v57 = vadd.f32 %v1431_v55, %v1705_v33  ;;  %v548_v58 = vpop.f32.mrb[11].mxu0 }
 0x10e   : > { %v549_v60 = vadd.f32 %v1705_v33, %v548_v58 }
 0x10f   : > { %v645_v61 = vpack.c.bf16 %v557_v57, %v554_v56 }
 0x110   : > { %v644_v62 = vpack.c.bf16 %v549_v60, %v546_v59 }
 0x112   : > { %v1434_v63 = vpop.f32.mrb[12].mxu0  ;;  %1476 = vmatprep.mubr.bf16.mxu1 %v644_v62 }
 0x113   : > { %v561_v0 = vpop.f32.mrb[13].mxu0  ;;  %1477 = vmatmul.mubr.bf16.gmra.mrb[8].mxu1 %v645_v61  ;;  %v570_v2 = vadd.f32 %v1434_v63, %v1705_v33 }
 0x114   : > { %v1435_v1 = vpop.f32.mrb[14].mxu0  ;;  %v562_v5 = vadd.f32 %v1705_v33, %v561_v0 }
 0x115   : > { %v573_v3 = vadd.f32 %v1435_v1, %v1705_v33  ;;  %v564_v4 = vpop.f32.mrb[15].mxu0 }
 0x116   : > { %v565_v6 = vadd.f32 %v1705_v33, %v564_v4 }
 0x117   : > { %v647_v7 = vpack.c.bf16 %v573_v3, %v570_v2 }
 0x118   : > { %v646_v8 = vpack.c.bf16 %v565_v6, %v562_v5 }
 0x11a   : > { %v1438_v9 = vpop.f32.mrb[16].mxu0  ;;  %1480 = vmatprep.mubr.bf16.mxu1 %v646_v8 }
 0x11b   : > { %v577_v10 = vpop.f32.mrb[17].mxu0  ;;  %1481 = vmatmul.mubr.bf16.gmra.mrb[12].mxu1 %v647_v7  ;;  %v586_v12 = vadd.f32 %v1438_v9, %v1705_v33 }
 0x11c   : > { %v1439_v11 = vpop.f32.mrb[18].mxu0  ;;  %v578_v15 = vadd.f32 %v1705_v33, %v577_v10 }
 0x11d   : > { %v589_v13 = vadd.f32 %v1439_v11, %v1705_v33  ;;  %v580_v14 = vpop.f32.mrb[19].mxu0 }
 0x11e   : > { %v581_v16 = vadd.f32 %v1705_v33, %v580_v14 }
 0x11f   : > { %v649_v17 = vpack.c.bf16 %v589_v13, %v586_v12 }
 0x120   : > { %v648_v18 = vpack.c.bf16 %v581_v16, %v578_v15 }
 0x122   : > { %v1442_v19 = vpop.f32.mrb[20].mxu0  ;;  %1484 = vmatprep.mubr.bf16.mxu1 %v648_v18 }
 0x123   : > { %v593_v20 = vpop.f32.mrb[21].mxu0  ;;  %1485 = vmatmul.mubr.bf16.gmra.mrb[16].mxu1 %v649_v17  ;;  %v602_v22 = vadd.f32 %v1442_v19, %v1705_v33 }
 0x124   : > { %v1443_v21 = vpop.f32.mrb[22].mxu0  ;;  %v594_v25 = vadd.f32 %v1705_v33, %v593_v20 }
 0x125   : > { %v605_v23 = vadd.f32 %v1443_v21, %v1705_v33  ;;  %v596_v24 = vpop.f32.mrb[23].mxu0 }
 0x126   : > { %v597_v26 = vadd.f32 %v1705_v33, %v596_v24 }
 0x127   : > { %v651_v27 = vpack.c.bf16 %v605_v23, %v602_v22 }
 0x128   : > { %v650_v28 = vpack.c.bf16 %v597_v26, %v594_v25 }
 0x12a   : > { %v1446_v29 = vpop.f32.mrb[24].mxu0  ;;  %1488 = vmatprep.mubr.bf16.mxu1 %v650_v28 }
 0x12b   : > { %v609_v30 = vpop.f32.mrb[25].mxu0  ;;  %1489 = vmatmul.mubr.bf16.gmra.mrb[20].mxu1 %v651_v27  ;;  %v618_v32 = vadd.f32 %v1446_v29, %v1705_v33 }
 0x12c   : > { %v1447_v31 = vpop.f32.mrb[26].mxu0  ;;  %v610_v36 = vadd.f32 %v1705_v33, %v609_v30 }
 0x12d   : > { %v621_v34 = vadd.f32 %v1447_v31, %v1705_v33  ;;  %v612_v35 = vpop.f32.mrb[27].mxu0 }
 0x12e   : > { %v613_v37 = vadd.f32 %v1705_v33, %v612_v35 }
 0x12f   : > { %v653_v38 = vpack.c.bf16 %v621_v34, %v618_v32 }
 0x130   : > { %v652_v39 = vpack.c.bf16 %v613_v37, %v610_v36 }
 0x132   : > { %v1450_v40 = vpop.f32.mrb[28].mxu0  ;;  %1492 = vmatprep.mubr.bf16.mxu1 %v652_v39 }
 0x133   : > { %v625_v41 = vpop.f32.mrb[29].mxu0  ;;  %1493 = vmatmul.mubr.bf16.gmra.mrb[24].mxu1 %v653_v38  ;;  %v634_v43 = vadd.f32 %v1450_v40, %v1705_v33 }
 0x134   : > { %v1451_v42 = vpop.f32.mrb[30].mxu0  ;;  %v626_v46 = vadd.f32 %v1705_v33, %v625_v41 }
 0x135   : > { %v637_v44 = vadd.f32 %v1451_v42, %v1705_v33  ;;  %v628_v45 = vpop.f32.mrb[31].mxu0 }
 0x136   : > { %v629_v47 = vadd.f32 %v1705_v33, %v628_v45 }
 0x137   : > { %v655_v48 = vpack.c.bf16 %v637_v44, %v634_v43 }
 0x138   : > { %v654_v49 = vpack.c.bf16 %v629_v47, %v626_v46 }
 0x13a   : > { %1496 = vmatprep.mubr.bf16.mxu1 %v654_v49 }
 0x13b   : > { %1497 = vmatmul.mubr.bf16.gmra.mrb[28].mxu1 %v655_v48 }
 0x1d6   : > { %v1470_v50 = vpop.f32.mrb[0].mxu1 }
 0x1d7   : > { %v761_v52 = vpop.f32.mrb[1].mxu1  ;;  %v770_v54 = vadd.f32 %v1470_v50, %v1742_v51 }
 0x1d8   : > { %v1471_v53 = vpop.f32.mrb[2].mxu1  ;;  %v762_v57 = vadd.f32 %v1742_v51, %v761_v52 }
 0x1d9   : > { %v773_v55 = vadd.f32 %v1471_v53, %v1742_v51  ;;  %v764_v56 = vpop.f32.mrb[3].mxu1 }
 0x1da   : > { %v765_v33 = vadd.f32 %v1742_v51, %v764_v56 }
 0x1db   : > { %v1269_v58 = vpack.c.bf16 %v773_v55, %v770_v54 }
 0x1dc   : > { %v1264_v59 = vpack.c.bf16 %v765_v33, %v762_v57 }
 0x1dd   : > { %1341 = vst [vmem:[%s1752_s23 + $0x8] sm:$0xff] %v1269_v58  }
 0x1de   : > { %1265 = vst [vmem:[%s1752_s23] sm:$0xff] %v1264_v59   ;;  %v1474_v60 = vpop.f32.mrb[4].mxu1 }
 0x1df   : > { %v777_v61 = vpop.f32.mrb[5].mxu1  ;;  %v786_v63 = vadd.f32 %v1474_v60, %v1742_v51 }
 0x1e0   : > { %v1475_v62 = vpop.f32.mrb[6].mxu1  ;;  %v778_v2 = vadd.f32 %v1742_v51, %v777_v61 }
 0x1e1   : > { %v789_v0 = vadd.f32 %v1475_v62, %v1742_v51  ;;  %v780_v1 = vpop.f32.mrb[7].mxu1 }
 0x1e2   : > { %v781_v3 = vadd.f32 %v1742_v51, %v780_v1 }
 0x1e3   : > { %v1279_v4 = vpack.c.bf16 %v789_v0, %v786_v63 }
 0x1e4   : > { %v1274_v5 = vpack.c.bf16 %v781_v3, %v778_v2 }
 0x1e5   : > { %1343 = vst [vmem:[%s1752_s23 + $0x18] sm:$0xff] %v1279_v4  }
 0x1e6   : > { %1342 = vst [vmem:[%s1752_s23 + $0x10] sm:$0xff] %v1274_v5   ;;  %v1478_v6 = vpop.f32.mrb[8].mxu1 }
 0x1e7   : > { %v793_v7 = vpop.f32.mrb[9].mxu1  ;;  %v802_v9 = vadd.f32 %v1478_v6, %v1742_v51 }
 0x1e8   : > { %v1479_v8 = vpop.f32.mrb[10].mxu1  ;;  %v794_v12 = vadd.f32 %v1742_v51, %v793_v7 }
 0x1e9   : > { %v805_v10 = vadd.f32 %v1479_v8, %v1742_v51  ;;  %v796_v11 = vpop.f32.mrb[11].mxu1 }
 0x1ea   : > { %v797_v13 = vadd.f32 %v1742_v51, %v796_v11 }
 0x1eb   : > { %v1289_v14 = vpack.c.bf16 %v805_v10, %v802_v9 }
 0x1ec   : > { %v1284_v15 = vpack.c.bf16 %v797_v13, %v794_v12 }
 0x1ed   : > { %1345 = vst [vmem:[%s1752_s23 + $0x28] sm:$0xff] %v1289_v14  }
 0x1ee   : > { %1344 = vst [vmem:[%s1752_s23 + $0x20] sm:$0xff] %v1284_v15   ;;  %v1482_v16 = vpop.f32.mrb[12].mxu1 }
 0x1ef   : > { %v809_v17 = vpop.f32.mrb[13].mxu1  ;;  %v818_v19 = vadd.f32 %v1482_v16, %v1742_v51 }
 0x1f0   : > { %v1483_v18 = vpop.f32.mrb[14].mxu1  ;;  %v810_v22 = vadd.f32 %v1742_v51, %v809_v17 }
 0x1f1   : > { %v821_v20 = vadd.f32 %v1483_v18, %v1742_v51  ;;  %v812_v21 = vpop.f32.mrb[15].mxu1 }
 0x1f2   : > { %v813_v23 = vadd.f32 %v1742_v51, %v812_v21 }
 0x1f3   : > { %v1299_v24 = vpack.c.bf16 %v821_v20, %v818_v19 }
 0x1f4   : > { %v1294_v25 = vpack.c.bf16 %v813_v23, %v810_v22 }
 0x1f5   : > { %1347 = vst [vmem:[%s1752_s23 + $0x38] sm:$0xff] %v1299_v24  }
 0x1f6   : > { %1346 = vst [vmem:[%s1752_s23 + $0x30] sm:$0xff] %v1294_v25   ;;  %v1486_v26 = vpop.f32.mrb[16].mxu1 }
 0x1f7   : > { %v825_v27 = vpop.f32.mrb[17].mxu1  ;;  %v834_v29 = vadd.f32 %v1486_v26, %v1742_v51 }
 0x1f8   : > { %v1487_v28 = vpop.f32.mrb[18].mxu1  ;;  %v826_v32 = vadd.f32 %v1742_v51, %v825_v27 }
 0x1f9   : > { %v837_v30 = vadd.f32 %v1487_v28, %v1742_v51  ;;  %v828_v31 = vpop.f32.mrb[19].mxu1 }
 0x1fa   : > { %v829_v34 = vadd.f32 %v1742_v51, %v828_v31 }
 0x1fb   : > { %v1309_v35 = vpack.c.bf16 %v837_v30, %v834_v29 }
 0x1fc   : > { %v1304_v36 = vpack.c.bf16 %v829_v34, %v826_v32 }
 0x1fd   : > { %1349 = vst [vmem:[%s1752_s23 + $0x48] sm:$0xff] %v1309_v35  }
 0x1fe   : > { %1348 = vst [vmem:[%s1752_s23 + $0x40] sm:$0xff] %v1304_v36   ;;  %v1490_v37 = vpop.f32.mrb[20].mxu1 }
 0x1ff   : > { %v841_v38 = vpop.f32.mrb[21].mxu1  ;;  %v850_v40 = vadd.f32 %v1490_v37, %v1742_v51 }
 0x200   : > { %v1491_v39 = vpop.f32.mrb[22].mxu1  ;;  %v842_v43 = vadd.f32 %v1742_v51, %v841_v38 }
 0x201   : > { %v853_v41 = vadd.f32 %v1491_v39, %v1742_v51  ;;  %v844_v42 = vpop.f32.mrb[23].mxu1 }
 0x202   : > { %v845_v44 = vadd.f32 %v1742_v51, %v844_v42 }
 0x203   : > { %v1319_v45 = vpack.c.bf16 %v853_v41, %v850_v40 }
 0x204   : > { %v1314_v46 = vpack.c.bf16 %v845_v44, %v842_v43 }
 0x205   : > { %1351 = vst [vmem:[%s1752_s23 + $0x58] sm:$0xff] %v1319_v45  }
 0x206   : > { %1350 = vst [vmem:[%s1752_s23 + $0x50] sm:$0xff] %v1314_v46   ;;  %v1494_v47 = vpop.f32.mrb[24].mxu1 }
 0x207   : > { %v857_v48 = vpop.f32.mrb[25].mxu1  ;;  %v866_v50 = vadd.f32 %v1494_v47, %v1742_v51 }
 0x208   : > { %v1495_v49 = vpop.f32.mrb[26].mxu1  ;;  %v858_v54 = vadd.f32 %v1742_v51, %v857_v48 }
 0x209   : > { %v869_v52 = vadd.f32 %v1495_v49, %v1742_v51  ;;  %v860_v53 = vpop.f32.mrb[27].mxu1 }
 0x20a   : > { %v861_v55 = vadd.f32 %v1742_v51, %v860_v53 }
 0x20b   : > { %v1329_v56 = vpack.c.bf16 %v869_v52, %v866_v50 }
 0x20c   : > { %v1324_v57 = vpack.c.bf16 %v861_v55, %v858_v54 }
 0x20d   : > { %1353 = vst [vmem:[%s1752_s23 + $0x68] sm:$0xff] %v1329_v56  }
 0x20e   : > { %1352 = vst [vmem:[%s1752_s23 + $0x60] sm:$0xff] %v1324_v57   ;;  %v1498_v33 = vpop.f32.mrb[28].mxu1 }
 0x20f   : > { %v873_v58 = vpop.f32.mrb[29].mxu1  ;;  %v882_v60 = vadd.f32 %v1498_v33, %v1742_v51 }
 0x210   : > { %v1499_v59 = vpop.f32.mrb[30].mxu1  ;;  %v874_v63 = vadd.f32 %v1742_v51, %v873_v58 }
 0x211   : > { %v885_v61 = vadd.f32 %v1499_v59, %v1742_v51  ;;  %v876_v62 = vpop.f32.mrb[31].mxu1 }
 0x212   : > { %v877_v0 = vadd.f32 %v1742_v51, %v876_v62 }
 0x213   : > { %v1339_v1 = vpack.c.bf16 %v885_v61, %v882_v60 }
 0x214   : > { %v1334_v2 = vpack.c.bf16 %v877_v0, %v874_v63 }
 0x215   : > { %1355 = vst [vmem:[%s1752_s23 + $0x78] sm:$0xff] %v1339_v1  }
 0x216   : > { %1354 = vst [vmem:[%s1752_s23 + $0x70] sm:$0xff] %v1334_v2  }
 0x217 PF: > { %s15_s20 = sadd.s32 1, %s1578_s20   ;;  %s1814_s18 = smov %s1574_s19 }
 0x218   : > { %p12_p5 = scmp.ge.s32.totalorder %s15_s20, 4   ;;  %s1815_s19 = smov %s1817_s21 }
 0x21a   :  { %14 = sbr.rel (!%p12_p5) target bundleno = 2 (0x2), region = 76 }

// kernel: tile.8
= control target key start
LH: loop header
LB: loop body
LE: loop exit
PB: predicated region body
PF: predicated region fallthrough
CT: control target
= control target key end

     0   :  { %s22_s0 = inlined_call_operand.vmem [shape: f32[4], index: 0, kind: input, shape index: {}]   ;;  %s23_s1 = inlined_call_operand.vmem [shape: f32[4,4], index: 1, kind: output, shape index: {}]  }
   0x1   :  { %v4_v0 = vld [vmem:[%s22_s0] ss:$0 sm:$0xff] }
   0x2   :  { %5 = vst [vmem:[%s23_s1] sm:$0xf] %v4_v0 }

// kernel: tile.9
= control target key start
LH: loop header
LB: loop body
LE: loop exit
PB: predicated region body
PF: predicated region fallthrough
CT: control target
= control target key end

     0   :  { %vm7_vm0 = vcmask 31744   ;;  %s37_s8 = smov 4   ;;  %s38_s9 = smov 8   ;;  %vm13_vm1 = vcmask 130144   ;;  %vm19_vm2 = vcmask 97344   ;;  %vm25_vm3 = vcmask 64544   ;;  %s55_s0 = inlined_call_operand.vmem [shape: f32[4,4], index: 0, kind: input, shape index: {}]   ;;  %s56_s1 = inlined_call_operand.vmem [shape: f32[16], index: 1, kind: output, shape index: {}]  }
   0x1   :  { %v4_v0 = vld [vmem:[%s55_s0] sm:$0xf]  ;;  %s36_s0 = smov 12  }
   0x2   :  { %5 = vst [vmem:[#allocation1] sm:$0xf] %v4_v0 }
   0x9   :  { %v10_v1 = vld [vmem:[#allocation1 + $0x3] sm:$0x1]   ;;  %v22_v2 = vld [vmem:[#allocation1 + $0x1] sm:$0x1]   ;;  %v6_v3 = vld [vmem:[#allocation1] sm:$0x1]  }
   0xa   :  { %11 = vrot.lane.b32.xlu0 %v10_v1, %s36_s0  ;;  %23 = vrot.lane.b32.xlu1 %v22_v2, %s37_s8  ;;  %v16_v4 = vld [vmem:[#allocation1 + $0x2] sm:$0x1]   ;;  %8 = vst.msk [vmem:[#allocation0] sm:$0x1] %vm7_vm0, %v6_v3  }
   0xe   :  { %17 = vrot.lane.b32.xlu0 %v16_v4, %s38_s9 }
  0x7c   :  { %v12_v5 = vpop.permute.xlu0 %11   ;;  %v24_v6 = vpop.permute.xlu1 %23  }
  0x7d   :  { %14 = vst.msk [vmem:[#allocation0] sm:$0x1] %vm13_vm1, %v12_v5  }
  0x80   :  { %v18_v7 = vpop.permute.xlu0 %17  }
  0x81   :  { %20 = vst.msk [vmem:[#allocation0] sm:$0x1] %vm19_vm2, %v18_v7  }
  0x82   :  { %26 = vst.msk [vmem:[#allocation0] sm:$0x1] %vm25_vm3, %v24_v6  }
  0x89   :  { %v30_v8 = vld [vmem:[#allocation0] sm:$0x1] }
  0x8a   :  { %32 = vst [vmem:[%s56_s1] sm:$0x1] %v30_v8 }

// kernel: up_n_forward.5
= control target key start
LH: loop header
LB: loop body
LE: loop exit
PB: predicated region body
PF: predicated region fallthrough
CT: control target
= control target key end

     0   :  { %s1323_s18 = smov 0   ;;  %s1325_s19 = smov 0   ;;  %s1534_s0 = inlined_call_operand.vmem [shape: bf16[512,128], index: 0, kind: input, shape index: {}]   ;;  %s1535_s1 = inlined_call_operand.vmem [shape: bf16[128,128], index: 1, kind: input, shape index: {}]   ;;  %s1536_s2 = inlined_call_operand.vmem [shape: f32[1,128], index: 2, kind: input, shape index: {}]   ;;  %s1537_s3 = inlined_call_operand.vmem [shape: bf16[128,128], index: 3, kind: input, shape index: {}]   ;;  %s1538_s4 = inlined_call_operand.vmem [shape: f32[1,128], index: 4, kind: input, shape index: {}]   ;;  %s1539_s5 = inlined_call_operand.vmem [shape: f32[512,128], index: 5, kind: output, shape index: {}]  }
   0x1   :  { %s1327_s20 = smov 0  }
   0x2 LB: > { %s27_s21 = sadd.s32 1, %s1287_s19  ;;  %p1028_p0 = scmp.ge.s32.totalorder %s1291_s20, 1  ;;  %s1291_s20 = sphi %s1327_s20, %s15_s20   ;;  %s1287_s19 = sphi %s1325_s19, %s1541_s19   ;;  %s1283_s18 = sphi %s1323_s18, %s1540_s18  }
   0x3   : > { %p29_p1 = scmp.ge.s32.totalorder %s27_s21, 2  ;;  %p219_p2 = scmp.lt.s32.totalorder %s1291_s20, 3 }
   0x5   : > { %s1543_s21 = smov (%p29_p1, %s27_s21), 0  ;;  %p220_p3 = pnand %p1028_p0, %p219_p2 }
   0x6   : > { %v1237_v0 = vld [vmem:[%s1535_s1] sm:$0xff] (!%p220_p3)   ;;  %s1029_s24 = sshll.u32 (!%p220_p3), %s1283_s18, 5  ;;  %v1238_v1 = vld [vmem:[%s1535_s1 + $0x8] sm:$0xff] (!%p220_p3)   ;;  %v1239_v2 = vld [vmem:[%s1535_s1 + $0x10] sm:$0xff] (!%p220_p3)  }
   0x7   : > { %223 = sbr.rel (%p220_p3) target bundleno = 533 (0x215), region = 40  ;;  %p258_p4 = scmp.lt.s32.totalorder (!%p220_p3), %s1029_s24, 63  ;;  %1117 = vmatprep.subr.bf16.mxu0 (!%p220_p3), %v1237_v0  ;;  %v1240_v3 = vld [vmem:[%s1535_s1 + $0x18] sm:$0xff] (!%p220_p3)   ;;  %v1241_v5 = vld [vmem:[%s1535_s1 + $0x20] sm:$0xff] (!%p220_p3)   ;;  %v1242_v6 = vld [vmem:[%s1535_s1 + $0x28] sm:$0xff] (!%p220_p3)  }
   0x8   : > { %1118 = vmatpush3.bf16.msra.mxu0 (!%p220_p3), %v1237_v0  ;;  %v1243_v7 = vld [vmem:[%s1535_s1 + $0x30] sm:$0xff] (!%p220_p3)   ;;  %v1244_v8 = vld [vmem:[%s1535_s1 + $0x38] sm:$0xff] (!%p220_p3)   ;;  %v1261_v9 = vld [vmem:[%s1537_s3] sm:$0xff] (!%p220_p3)  }
   0x9   : > { %1119 = vmatprep.subr.bf16.mxu0 (!%p220_p3), %v1238_v1  ;;  %v1262_v10 = vld [vmem:[%s1537_s3 + $0x8] sm:$0xff] (!%p220_p3)   ;;  %1165 = vmatprep.subr.bf16.mxu1 (!%p220_p3), %v1261_v9  ;;  %v1263_v11 = vld [vmem:[%s1537_s3 + $0x10] sm:$0xff] (!%p220_p3)   ;;  %v1264_v14 = vld [vmem:[%s1537_s3 + $0x18] sm:$0xff] (!%p220_p3)  }
   0xa   : > { %1166 = vmatpush3.bf16.msra.mxu1 (!%p220_p3), %v1261_v9  ;;  %v1265_v15 = vld [vmem:[%s1537_s3 + $0x20] sm:$0xff] (!%p220_p3)   ;;  %v1266_v18 = vld [vmem:[%s1537_s3 + $0x28] sm:$0xff] (!%p220_p3)   ;;  %v1267_v30 = vld [vmem:[%s1537_s3 + $0x30] sm:$0xff] (!%p220_p3)  }
   0xb   : > { %1167 = vmatprep.subr.bf16.mxu1 (!%p220_p3), %v1262_v10  ;;  %v1268_v31 = vld [vmem:[%s1537_s3 + $0x38] sm:$0xff] (!%p220_p3)   ;;  %v1416_v33 = vld [vmem:[%s1536_s2] ss:$0 sm:$0xff] (!%p220_p3) }
   0xc   : > { %1120 = vmatpush3.bf16.msra.mxu0 (!%p220_p3), %v1238_v1 }
   0xd   : > { %1121 = vmatprep.subr.bf16.mxu0 (!%p220_p3), %v1239_v2 }
   0xe   : > { %s1545_s24 = smov (!%p258_p4, %s1029_s24), 63  ;;  %1168 = vmatpush3.bf16.msra.mxu1 %v1262_v10 }
   0xf   : > { %s1030_s29 = sshll.u32 %s1545_s24, 2  ;;  %1169 = vmatprep.subr.bf16.mxu1 %v1263_v11 }
  0x10   : > { %s1356_s7 = scalar_lea.vmem %s1534_s0, %s1030_s29  ;;  %1122 = vmatpush3.bf16.msra.mxu0 %v1239_v2 }
  0x11   : > { %v1245_v4 = vld [vmem:[%s1356_s7] sm:$0xff]   ;;  %1123 = vmatprep.subr.bf16.mxu0 %v1240_v3  ;;  %v1246_v12 = vld [vmem:[%s1356_s7 + $0x8] sm:$0xff]   ;;  %v1247_v13 = vld [vmem:[%s1356_s7 + $0x10] sm:$0xff]  }
  0x12   : > { %1133 = vmatprep.mubr.bf16.mxu0 %v1245_v4  ;;  %1170 = vmatpush3.bf16.msra.mxu1 %v1263_v11  ;;  %v1248_v16 = vld [vmem:[%s1356_s7 + $0x18] sm:$0xff]   ;;  %v1249_v17 = vld [vmem:[%s1356_s7 + $0x20] sm:$0xff]   ;;  %v1250_v19 = vld [vmem:[%s1356_s7 + $0x28] sm:$0xff]  }
  0x13   : > { %1171 = vmatprep.subr.bf16.mxu1 %v1264_v14  ;;  %v1251_v20 = vld [vmem:[%s1356_s7 + $0x30] sm:$0xff]   ;;  %v1252_v21 = vld [vmem:[%s1356_s7 + $0x38] sm:$0xff]   ;;  %v1253_v22 = vld [vmem:[%s1356_s7 + $0x40] sm:$0xff]  }
  0x14   : > { %1124 = vmatpush3.bf16.msra.mxu0 %v1240_v3  ;;  %v1254_v23 = vld [vmem:[%s1356_s7 + $0x48] sm:$0xff]   ;;  %v1255_v24 = vld [vmem:[%s1356_s7 + $0x50] sm:$0xff]   ;;  %v1256_v25 = vld [vmem:[%s1356_s7 + $0x58] sm:$0xff]  }
  0x15   : > { %1125 = vmatprep.subr.bf16.mxu0 %v1241_v5  ;;  %v1257_v26 = vld [vmem:[%s1356_s7 + $0x60] sm:$0xff]   ;;  %v1258_v27 = vld [vmem:[%s1356_s7 + $0x68] sm:$0xff]   ;;  %v1259_v28 = vld [vmem:[%s1356_s7 + $0x70] sm:$0xff]  }
  0x16   : > { %1172 = vmatpush3.bf16.msra.mxu1 %v1264_v14  ;;  %v1260_v29 = vld [vmem:[%s1356_s7 + $0x78] sm:$0xff]   ;;  %s1032_s7 = sshll.u32 %s1545_s24, 3 }
  0x17   : > { %1173 = vmatprep.subr.bf16.mxu1 %v1265_v15  ;;  %s1459_s23 = scalar_lea.vmem %s1539_s5, %s1032_s7 }
  0x18   : > { %1126 = vmatpush3.bf16.msra.mxu0 %v1241_v5 }
  0x19   : > { %1127 = vmatprep.subr.bf16.mxu0 %v1242_v6 }
  0x1a   : > { %1174 = vmatpush3.bf16.msra.mxu1 %v1265_v15 }
  0x1b   : > { %1175 = vmatprep.subr.bf16.mxu1 %v1266_v18 }
  0x1c   : > { %1128 = vmatpush3.bf16.msra.mxu0 %v1242_v6 }
  0x1d   : > { %1129 = vmatprep.subr.bf16.mxu0 %v1243_v7 }
  0x1e   : > { %1176 = vmatpush3.bf16.msra.mxu1 %v1266_v18 }
  0x1f   : > { %1177 = vmatprep.subr.bf16.mxu1 %v1267_v30 }
  0x20   : > { %1130 = vmatpush3.bf16.msra.mxu0 %v1243_v7 }
  0x21   : > { %1131 = vmatprep.subr.bf16.mxu0 %v1244_v8 }
  0x22   : > { %1178 = vmatpush3.bf16.msra.mxu1 %v1267_v30 }
  0x23   : > { %1179 = vmatprep.subr.bf16.mxu1 %v1268_v31 }
  0x24   : > { %1132 = vmatpush3.bf16.msra.mxu0 %v1244_v8 }
  0x26   : > { %1180 = vmatpush3.bf16.msra.mxu1 %v1268_v31 }
  0x27   : > { %1134 = vmatmul.mubr.bf16.vlgmr.msra.gmra.mrb[0].mxu0 %v1246_v12 }
  0x28   : > { %1137 = vmatprep.mubr.bf16.mxu0 %v1247_v13 }
  0x2f   : > { %1138 = vmatmul.mubr.bf16.gmra.mrb[4].mxu0 %v1248_v16 }
  0x30   : > { %1141 = vmatprep.mubr.bf16.mxu0 %v1249_v17 }
  0x37   : > { %1142 = vmatmul.mubr.bf16.gmra.mrb[8].mxu0 %v1250_v19 }
  0x38   : > { %1145 = vmatprep.mubr.bf16.mxu0 %v1251_v20 }
  0x3f   : > { %1146 = vmatmul.mubr.bf16.gmra.mrb[12].mxu0 %v1252_v21 }
  0x40   : > { %1149 = vmatprep.mubr.bf16.mxu0 %v1253_v22 }
  0x47   : > { %1150 = vmatmul.mubr.bf16.gmra.mrb[16].mxu0 %v1254_v23 }
  0x48   : > { %1153 = vmatprep.mubr.bf16.mxu0 %v1255_v24 }
  0x4f   : > { %1154 = vmatmul.mubr.bf16.gmra.mrb[20].mxu0 %v1256_v25 }
  0x50   : > { %1157 = vmatprep.mubr.bf16.mxu0 %v1257_v26 }
  0x57   : > { %1158 = vmatmul.mubr.bf16.gmra.mrb[24].mxu0 %v1258_v27 }
  0x58   : > { %1161 = vmatprep.mubr.bf16.mxu0 %v1259_v28 }
  0x5f   : > { %1162 = vmatmul.mubr.bf16.gmra.mrb[28].mxu0 %v1260_v29 }
  0xfa   : > { %v1135_v32 = vpop.f32.mrb[0].mxu0 }
  0xfb   : > { %v513_v34 = vpop.f32.mrb[1].mxu0  ;;  %v522_v36 = vadd.f32 %v1135_v32, %v1416_v33 }
  0xfc   : > { %v1136_v35 = vpop.f32.mrb[2].mxu0  ;;  %v514_v39 = vadd.f32 %v1416_v33, %v513_v34 }
  0xfd   : > { %v525_v37 = vadd.f32 %v1136_v35, %v1416_v33  ;;  %v516_v38 = vpop.f32.mrb[3].mxu0 }
  0xfe   : > { %v517_v40 = vadd.f32 %v1416_v33, %v516_v38 }
  0xff   : > { %v641_v41 = vpack.c.bf16 %v525_v37, %v522_v36 }
 0x100   : > { %v640_v42 = vpack.c.bf16 %v517_v40, %v514_v39 }
 0x102   : > { %v1139_v43 = vpop.f32.mrb[4].mxu0  ;;  %1181 = vmatprep.mubr.bf16.mxu1 %v640_v42 }
 0x103   : > { %v529_v44 = vpop.f32.mrb[5].mxu0  ;;  %1182 = vmatmul.mubr.bf16.vlgmr.msra.gmra.mrb[0].mxu1 %v641_v41  ;;  %v538_v46 = vadd.f32 %v1139_v43, %v1416_v33 }
 0x104   : > { %v1140_v45 = vpop.f32.mrb[6].mxu0  ;;  %v530_v49 = vadd.f32 %v1416_v33, %v529_v44 }
 0x105   : > { %v541_v47 = vadd.f32 %v1140_v45, %v1416_v33  ;;  %v532_v48 = vpop.f32.mrb[7].mxu0 }
 0x106   : > { %v533_v50 = vadd.f32 %v1416_v33, %v532_v48 }
 0x107   : > { %v643_v51 = vpack.c.bf16 %v541_v47, %v538_v46 }
 0x108   : > { %v642_v52 = vpack.c.bf16 %v533_v50, %v530_v49  ;;  %v1454_v50 = vld [vmem:[%s1538_s4] ss:$0 sm:$0xff] }
 0x10a   : > { %v1143_v53 = vpop.f32.mrb[8].mxu0  ;;  %1185 = vmatprep.mubr.bf16.mxu1 %v642_v52 }
 0x10b   : > { %v545_v54 = vpop.f32.mrb[9].mxu0  ;;  %1186 = vmatmul.mubr.bf16.gmra.mrb[4].mxu1 %v643_v51  ;;  %v554_v56 = vadd.f32 %v1143_v53, %v1416_v33 }
 0x10c   : > { %v1144_v55 = vpop.f32.mrb[10].mxu0  ;;  %v546_v59 = vadd.f32 %v1416_v33, %v545_v54 }
 0x10d   : > { %v557_v57 = vadd.f32 %v1144_v55, %v1416_v33  ;;  %v548_v58 = vpop.f32.mrb[11].mxu0 }
 0x10e   : > { %v549_v60 = vadd.f32 %v1416_v33, %v548_v58 }
 0x10f   : > { %v645_v61 = vpack.c.bf16 %v557_v57, %v554_v56 }
 0x110   : > { %v644_v62 = vpack.c.bf16 %v549_v60, %v546_v59 }
 0x112   : > { %v1147_v63 = vpop.f32.mrb[12].mxu0  ;;  %1189 = vmatprep.mubr.bf16.mxu1 %v644_v62 }
 0x113   : > { %v561_v0 = vpop.f32.mrb[13].mxu0  ;;  %1190 = vmatmul.mubr.bf16.gmra.mrb[8].mxu1 %v645_v61  ;;  %v570_v2 = vadd.f32 %v1147_v63, %v1416_v33 }
 0x114   : > { %v1148_v1 = vpop.f32.mrb[14].mxu0  ;;  %v562_v5 = vadd.f32 %v1416_v33, %v561_v0 }
 0x115   : > { %v573_v3 = vadd.f32 %v1148_v1, %v1416_v33  ;;  %v564_v4 = vpop.f32.mrb[15].mxu0 }
 0x116   : > { %v565_v6 = vadd.f32 %v1416_v33, %v564_v4 }
 0x117   : > { %v647_v7 = vpack.c.bf16 %v573_v3, %v570_v2 }
 0x118   : > { %v646_v8 = vpack.c.bf16 %v565_v6, %v562_v5 }
 0x11a   : > { %v1151_v9 = vpop.f32.mrb[16].mxu0  ;;  %1193 = vmatprep.mubr.bf16.mxu1 %v646_v8 }
 0x11b   : > { %v577_v10 = vpop.f32.mrb[17].mxu0  ;;  %1194 = vmatmul.mubr.bf16.gmra.mrb[12].mxu1 %v647_v7  ;;  %v586_v12 = vadd.f32 %v1151_v9, %v1416_v33 }
 0x11c   : > { %v1152_v11 = vpop.f32.mrb[18].mxu0  ;;  %v578_v15 = vadd.f32 %v1416_v33, %v577_v10 }
 0x11d   : > { %v589_v13 = vadd.f32 %v1152_v11, %v1416_v33  ;;  %v580_v14 = vpop.f32.mrb[19].mxu0 }
 0x11e   : > { %v581_v16 = vadd.f32 %v1416_v33, %v580_v14 }
 0x11f   : > { %v649_v17 = vpack.c.bf16 %v589_v13, %v586_v12 }
 0x120   : > { %v648_v18 = vpack.c.bf16 %v581_v16, %v578_v15 }
 0x122   : > { %v1155_v19 = vpop.f32.mrb[20].mxu0  ;;  %1197 = vmatprep.mubr.bf16.mxu1 %v648_v18 }
 0x123   : > { %v593_v20 = vpop.f32.mrb[21].mxu0  ;;  %1198 = vmatmul.mubr.bf16.gmra.mrb[16].mxu1 %v649_v17  ;;  %v602_v22 = vadd.f32 %v1155_v19, %v1416_v33 }
 0x124   : > { %v1156_v21 = vpop.f32.mrb[22].mxu0  ;;  %v594_v25 = vadd.f32 %v1416_v33, %v593_v20 }
 0x125   : > { %v605_v23 = vadd.f32 %v1156_v21, %v1416_v33  ;;  %v596_v24 = vpop.f32.mrb[23].mxu0 }
 0x126   : > { %v597_v26 = vadd.f32 %v1416_v33, %v596_v24 }
 0x127   : > { %v651_v27 = vpack.c.bf16 %v605_v23, %v602_v22 }
 0x128   : > { %v650_v28 = vpack.c.bf16 %v597_v26, %v594_v25 }
 0x12a   : > { %v1159_v29 = vpop.f32.mrb[24].mxu0  ;;  %1201 = vmatprep.mubr.bf16.mxu1 %v650_v28 }
 0x12b   : > { %v609_v30 = vpop.f32.mrb[25].mxu0  ;;  %1202 = vmatmul.mubr.bf16.gmra.mrb[20].mxu1 %v651_v27  ;;  %v618_v32 = vadd.f32 %v1159_v29, %v1416_v33 }
 0x12c   : > { %v1160_v31 = vpop.f32.mrb[26].mxu0  ;;  %v610_v36 = vadd.f32 %v1416_v33, %v609_v30 }
 0x12d   : > { %v621_v34 = vadd.f32 %v1160_v31, %v1416_v33  ;;  %v612_v35 = vpop.f32.mrb[27].mxu0 }
 0x12e   : > { %v613_v37 = vadd.f32 %v1416_v33, %v612_v35 }
 0x12f   : > { %v653_v38 = vpack.c.bf16 %v621_v34, %v618_v32 }
 0x130   : > { %v652_v39 = vpack.c.bf16 %v613_v37, %v610_v36 }
 0x132   : > { %v1163_v40 = vpop.f32.mrb[28].mxu0  ;;  %1205 = vmatprep.mubr.bf16.mxu1 %v652_v39 }
 0x133   : > { %v625_v41 = vpop.f32.mrb[29].mxu0  ;;  %1206 = vmatmul.mubr.bf16.gmra.mrb[24].mxu1 %v653_v38  ;;  %v634_v43 = vadd.f32 %v1163_v40, %v1416_v33 }
 0x134   : > { %v1164_v42 = vpop.f32.mrb[30].mxu0  ;;  %v626_v46 = vadd.f32 %v1416_v33, %v625_v41 }
 0x135   : > { %v637_v44 = vadd.f32 %v1164_v42, %v1416_v33  ;;  %v628_v45 = vpop.f32.mrb[31].mxu0 }
 0x136   : > { %v629_v47 = vadd.f32 %v1416_v33, %v628_v45 }
 0x137   : > { %v655_v48 = vpack.c.bf16 %v637_v44, %v634_v43 }
 0x138   : > { %v654_v49 = vpack.c.bf16 %v629_v47, %v626_v46 }
 0x13a   : > { %1209 = vmatprep.mubr.bf16.mxu1 %v654_v49 }
 0x13b   : > { %1210 = vmatmul.mubr.bf16.gmra.mrb[28].mxu1 %v655_v48 }
 0x1d6   : > { %v1183_v33 = vpop.f32.mrb[0].mxu1 }
 0x1d7   : > { %v770_v51 = vadd.f32 %v1183_v33, %v1454_v50  ;;  %v761_v52 = vpop.f32.mrb[1].mxu1 }
 0x1d8   : > { %v762_v53 = vadd.f32 %v1454_v50, %v761_v52  ;;  %v1184_v54 = vpop.f32.mrb[2].mxu1 }
 0x1d9   : > { %890 = vst [vmem:[%s1459_s23 + $0x10] sm:$0xff] %v770_v51  ;;  %v773_v55 = vadd.f32 %v1184_v54, %v1454_v50  ;;  %v764_v56 = vpop.f32.mrb[3].mxu1 }
 0x1da   : > { %888 = vst [vmem:[%s1459_s23] sm:$0xff] %v762_v53  ;;  %v765_v57 = vadd.f32 %v1454_v50, %v764_v56 }
 0x1db   : > { %891 = vst [vmem:[%s1459_s23 + $0x18] sm:$0xff] %v773_v55 }
 0x1dc   : > { %889 = vst [vmem:[%s1459_s23 + $0x8] sm:$0xff] %v765_v57 }
 0x1de   : > { %v1187_v58 = vpop.f32.mrb[4].mxu1 }
 0x1df   : > { %v786_v59 = vadd.f32 %v1187_v58, %v1454_v50  ;;  %v777_v60 = vpop.f32.mrb[5].mxu1 }
 0x1e0   : > { %v778_v61 = vadd.f32 %v1454_v50, %v777_v60  ;;  %v1188_v62 = vpop.f32.mrb[6].mxu1 }
 0x1e1   : > { %894 = vst [vmem:[%s1459_s23 + $0x30] sm:$0xff] %v786_v59  ;;  %v789_v63 = vadd.f32 %v1188_v62, %v1454_v50  ;;  %v780_v0 = vpop.f32.mrb[7].mxu1 }
 0x1e2   : > { %892 = vst [vmem:[%s1459_s23 + $0x20] sm:$0xff] %v778_v61  ;;  %v781_v1 = vadd.f32 %v1454_v50, %v780_v0 }
 0x1e3   : > { %895 = vst [vmem:[%s1459_s23 + $0x38] sm:$0xff] %v789_v63 }
 0x1e4   : > { %893 = vst [vmem:[%s1459_s23 + $0x28] sm:$0xff] %v781_v1 }
 0x1e6   : > { %v1191_v2 = vpop.f32.mrb[8].mxu1 }
 0x1e7   : > { %v802_v3 = vadd.f32 %v1191_v2, %v1454_v50  ;;  %v793_v4 = vpop.f32.mrb[9].mxu1 }
 0x1e8   : > { %v794_v5 = vadd.f32 %v1454_v50, %v793_v4  ;;  %v1192_v6 = vpop.f32.mrb[10].mxu1 }
 0x1e9   : > { %898 = vst [vmem:[%s1459_s23 + $0x50] sm:$0xff] %v802_v3  ;;  %v805_v7 = vadd.f32 %v1192_v6, %v1454_v50  ;;  %v796_v8 = vpop.f32.mrb[11].mxu1 }
 0x1ea   : > { %896 = vst [vmem:[%s1459_s23 + $0x40] sm:$0xff] %v794_v5  ;;  %v797_v9 = vadd.f32 %v1454_v50, %v796_v8 }
 0x1eb   : > { %899 = vst [vmem:[%s1459_s23 + $0x58] sm:$0xff] %v805_v7 }
 0x1ec   : > { %897 = vst [vmem:[%s1459_s23 + $0x48] sm:$0xff] %v797_v9 }
 0x1ee   : > { %v1195_v10 = vpop.f32.mrb[12].mxu1 }
 0x1ef   : > { %v818_v11 = vadd.f32 %v1195_v10, %v1454_v50  ;;  %v809_v12 = vpop.f32.mrb[13].mxu1 }
 0x1f0   : > { %v810_v13 = vadd.f32 %v1454_v50, %v809_v12  ;;  %v1196_v14 = vpop.f32.mrb[14].mxu1 }
 0x1f1   : > { %902 = vst [vmem:[%s1459_s23 + $0x70] sm:$0xff] %v818_v11  ;;  %v821_v15 = vadd.f32 %v1196_v14, %v1454_v50  ;;  %v812_v16 = vpop.f32.mrb[15].mxu1 }
 0x1f2   : > { %900 = vst [vmem:[%s1459_s23 + $0x60] sm:$0xff] %v810_v13  ;;  %v813_v17 = vadd.f32 %v1454_v50, %v812_v16 }
 0x1f3   : > { %903 = vst [vmem:[%s1459_s23 + $0x78] sm:$0xff] %v821_v15 }
 0x1f4   : > { %901 = vst [vmem:[%s1459_s23 + $0x68] sm:$0xff] %v813_v17 }
 0x1f6   : > { %v1199_v18 = vpop.f32.mrb[16].mxu1 }
 0x1f7   : > { %v834_v19 = vadd.f32 %v1199_v18, %v1454_v50  ;;  %v825_v20 = vpop.f32.mrb[17].mxu1 }
 0x1f8   : > { %v826_v21 = vadd.f32 %v1454_v50, %v825_v20  ;;  %v1200_v22 = vpop.f32.mrb[18].mxu1 }
 0x1f9   : > { %906 = vst [vmem:[%s1459_s23 + $0x90] sm:$0xff] %v834_v19  ;;  %v837_v23 = vadd.f32 %v1200_v22, %v1454_v50  ;;  %v828_v24 = vpop.f32.mrb[19].mxu1 }
 0x1fa   : > { %904 = vst [vmem:[%s1459_s23 + $0x80] sm:$0xff] %v826_v21  ;;  %v829_v25 = vadd.f32 %v1454_v50, %v828_v24 }
 0x1fb   : > { %907 = vst [vmem:[%s1459_s23 + $0x98] sm:$0xff] %v837_v23 }
 0x1fc   : > { %905 = vst [vmem:[%s1459_s23 + $0x88] sm:$0xff] %v829_v25 }
 0x1fe   : > { %v1203_v26 = vpop.f32.mrb[20].mxu1 }
 0x1ff   : > { %v850_v27 = vadd.f32 %v1203_v26, %v1454_v50  ;;  %v841_v28 = vpop.f32.mrb[21].mxu1 }
 0x200   : > { %v842_v29 = vadd.f32 %v1454_v50, %v841_v28  ;;  %v1204_v30 = vpop.f32.mrb[22].mxu1 }
 0x201   : > { %910 = vst [vmem:[%s1459_s23 + $0xb0] sm:$0xff] %v850_v27  ;;  %v853_v31 = vadd.f32 %v1204_v30, %v1454_v50  ;;  %v844_v32 = vpop.f32.mrb[23].mxu1 }
 0x202   : > { %908 = vst [vmem:[%s1459_s23 + $0xa0] sm:$0xff] %v842_v29  ;;  %v845_v34 = vadd.f32 %v1454_v50, %v844_v32 }
 0x203   : > { %911 = vst [vmem:[%s1459_s23 + $0xb8] sm:$0xff] %v853_v31 }
 0x204   : > { %909 = vst [vmem:[%s1459_s23 + $0xa8] sm:$0xff] %v845_v34 }
 0x206   : > { %v1207_v35 = vpop.f32.mrb[24].mxu1 }
 0x207   : > { %v866_v36 = vadd.f32 %v1207_v35, %v1454_v50  ;;  %v857_v37 = vpop.f32.mrb[25].mxu1 }
 0x208   : > { %v858_v38 = vadd.f32 %v1454_v50, %v857_v37  ;;  %v1208_v39 = vpop.f32.mrb[26].mxu1 }
 0x209   : > { %914 = vst [vmem:[%s1459_s23 + $0xd0] sm:$0xff] %v866_v36  ;;  %v869_v40 = vadd.f32 %v1208_v39, %v1454_v50  ;;  %v860_v41 = vpop.f32.mrb[27].mxu1 }
 0x20a   : > { %912 = vst [vmem:[%s1459_s23 + $0xc0] sm:$0xff] %v858_v38  ;;  %v861_v42 = vadd.f32 %v1454_v50, %v860_v41 }
 0x20b   : > { %915 = vst [vmem:[%s1459_s23 + $0xd8] sm:$0xff] %v869_v40 }
 0x20c   : > { %913 = vst [vmem:[%s1459_s23 + $0xc8] sm:$0xff] %v861_v42 }
 0x20e   : > { %v1211_v43 = vpop.f32.mrb[28].mxu1 }
 0x20f   : > { %v882_v44 = vadd.f32 %v1211_v43, %v1454_v50  ;;  %v873_v45 = vpop.f32.mrb[29].mxu1 }
 0x210   : > { %v874_v46 = vadd.f32 %v1454_v50, %v873_v45  ;;  %v1212_v47 = vpop.f32.mrb[30].mxu1 }
 0x211   : > { %918 = vst [vmem:[%s1459_s23 + $0xf0] sm:$0xff] %v882_v44  ;;  %v885_v48 = vadd.f32 %v1212_v47, %v1454_v50  ;;  %v876_v49 = vpop.f32.mrb[31].mxu1 }
 0x212   : > { %916 = vst [vmem:[%s1459_s23 + $0xe0] sm:$0xff] %v874_v46  ;;  %v877_v33 = vadd.f32 %v1454_v50, %v876_v49 }
 0x213   : > { %919 = vst [vmem:[%s1459_s23 + $0xf8] sm:$0xff] %v885_v48 }
 0x214   : > { %917 = vst [vmem:[%s1459_s23 + $0xe8] sm:$0xff] %v877_v33 }
 0x215 PF: > { %s15_s20 = sadd.s32 1, %s1291_s20   ;;  %s1540_s18 = smov %s1287_s19 }
 0x216   : > { %p12_p5 = scmp.ge.s32.totalorder %s15_s20, 4   ;;  %s1541_s19 = smov %s1543_s21 }
 0x218   :  { %14 = sbr.rel (!%p12_p5) target bundleno = 2 (0x2), region = 76 }

</bundles_post_ra>
